<compile_context>
chip_gen: v7x
topology: tpu7x:2x2x1
jax: 0.10.0
libtpu: 0.0.40
codegen_flags: <defaults>
</compile_context>

<pallas_src>
import functools

import jax
import jax.numpy as jnp
from jax import lax
from jax.experimental import pallas as pl
from jax.experimental.pallas import tpu as pltpu


# ----------------------------------------------------------------------------
# Fused Pallas kernel: normalize -> correlate (all pairs at once) -> clamp ->
# per-row partial sums of the loss terms.
# ----------------------------------------------------------------------------
def _fused_corr_loss_kernel(lf_ref, lc_ref, rf_ref, rc_ref, out_ref, *,
                            num_pairs, pointwise, zero_clamp, stabilize):
    """Shapes (per batch, leading batch dim squeezed by the BlockSpec):
         lf_ref : (P,  Cf)  LHS feats   (pixels on sublanes, channels on lanes)
         lc_ref : (P,  Cc)  LHS code
         rf_ref : (Cf, NP)  RHS feats, all pairs stacked along lanes (NP = num_pairs*P)
         rc_ref : (Cc, NP)  RHS code
         out_ref: (3,  NP)  row 0: sum_p cd_c * fd(_centered)
                            row 1: sum_p cd_c
                            row 2: sum_p fd
    """
    P = lf_ref.shape[0]

    def _norm_rows(x):  # F.normalize along the last axis (channels on lanes), eps=1e-10
        ss = jnp.sum(x * x, axis=1, keepdims=True)
        return x * lax.rsqrt(jnp.maximum(ss, 1e-20))  # == x / max(||x||, 1e-10)

    def _norm_cols(x):  # F.normalize along the first axis (channels on sublanes)
        ss = jnp.sum(x * x, axis=0, keepdims=True)
        return x * lax.rsqrt(jnp.maximum(ss, 1e-20))

    lfn = _norm_rows(lf_ref[...])
    lcn = _norm_rows(lc_ref[...])
    rfn = _norm_cols(rf_ref[...])
    rcn = _norm_cols(rc_ref[...])

    # Feature correlation: one lane-dense MXU matmul for all pairs at once.
    fd = jnp.dot(lfn, rfn, preferred_element_type=jnp.float32)          # (P, NP)

    # Code correlation: contraction depth Cc is tiny -> unrolled VPU outer products
    # (broadcast-FMAs) instead of an under-filled MXU pass.
    Cc = lc_ref.shape[1]
    if Cc <= 8:
        cd = lcn[:, 0:1] * rcn[0:1, :]                                   # (P, NP)
        for c in range(1, Cc):
            cd = cd + lcn[:, c:c + 1] * rcn[c:c + 1, :]
    else:
        cd = jnp.dot(lcn, rcn, preferred_element_type=jnp.float32)

    min_val = 0.0 if zero_clamp else -9999.0
    if stabilize:
        cd_c = jnp.clip(cd, min_val, 0.8)
    else:
        cd_c = jnp.maximum(cd, min_val)

    # Lane-dense partial reductions over the row (sublane) axis.
    out_ref[1:2, :] = jnp.sum(cd_c, axis=0, keepdims=True)
    out_ref[2:3, :] = jnp.sum(fd, axis=0, keepdims=True)

    if pointwise:
        inv_p = 1.0 / P
        for k in range(num_pairs):            # static unroll over pairs
            lo = k * P
            fd_k = fd[:, lo:lo + P]                                      # (P, P)
            row_mean = jnp.sum(fd_k, axis=1, keepdims=True) * inv_p      # (P, 1)
            prod = jnp.sum(cd_c[:, lo:lo + P] * (fd_k - row_mean),
                           axis=0, keepdims=True)                        # (1, P)
            out_ref[0:1, lo:lo + P] = prod
    else:
        out_ref[0:1, :] = jnp.sum(cd_c * fd, axis=0, keepdims=True)


def _fused_corr_loss(cfg, lhs_f, lhs_c, rhs_f, rhs_c, shifts):
    """Returns per-pair loss means: [pos_intra, pos_inter, neg_0, neg_1, ...]."""
    B, P, Cf = lhs_f.shape
    Cc = lhs_c.shape[2]
    NP = rhs_f.shape[2]
    num_pairs = NP // P

    rows = pl.pallas_call(
        functools.partial(
            _fused_corr_loss_kernel,
            num_pairs=num_pairs,
            pointwise=bool(cfg["pointwise"]),
            zero_clamp=bool(cfg["zero_clamp"]),
            stabilize=bool(cfg["stabilize"]),
        ),
        out_shape=jax.ShapeDtypeStruct((B, 3, NP), jnp.float32),
        grid=(B,),
        in_specs=[
            pl.BlockSpec((None, P, Cf), lambda b: (b, 0, 0)),
            pl.BlockSpec((None, P, Cc), lambda b: (b, 0, 0)),
            pl.BlockSpec((None, Cf, NP), lambda b: (b, 0, 0)),
            pl.BlockSpec((None, Cc, NP), lambda b: (b, 0, 0)),
        ],
        out_specs=pl.BlockSpec((None, 3, NP), lambda b: (b, 0, 0)),
        compiler_params=pltpu.CompilerParams(dimension_semantics=("parallel",)),
    )(lhs_f, lhs_c, rhs_f, rhs_c)

    # Tiny finalize (a few KiB of partial sums) — fuses into the surrounding jit.
    sums = jnp.sum(rows.reshape(B, 3, num_pairs, P), axis=(0, 3))  # (3, num_pairs)
    s_prod, s_cd, s_fd = sums[0], sums[1], sums[2]
    n = float(B * P * P)
    if cfg["pointwise"]:
        # fd_final = (fd - row_mean) + mean(fd); loss = -cd_c * (fd_final - shift)
        loss_means = (-s_prod - (s_fd / n) * s_cd + shifts * s_cd) / n
    else:
        loss_means = (-s_prod + shifts * s_cd) / n
    return loss_means


# ----------------------------------------------------------------------------
# Plain-JAX glue: bilinear grid_sample (border padding, align_corners=True),
# coordinate sampling, super_perm, operand stacking.
# ----------------------------------------------------------------------------
def _grid_sample_bilinear(t, grid):
    """F.grid_sample(t, grid, padding_mode='border', align_corners=True) equivalent."""
    B, C, H, W = t.shape
    x = grid[..., 0]  # width coordinate in [-1, 1]
    y = grid[..., 1]  # height coordinate

    ix = (x + 1.0) * (W - 1) / 2.0
    iy = (y + 1.0) * (H - 1) / 2.0
    ix = jnp.clip(ix, 0.0, W - 1)  # border padding: clip coords before weighting
    iy = jnp.clip(iy, 0.0, H - 1)

    ix0f = jnp.floor(ix)
    iy0f = jnp.floor(iy)
    wx1 = ix - ix0f
    wx0 = 1.0 - wx1
    wy1 = iy - iy0f
    wy0 = 1.0 - wy1

    ix0 = jnp.clip(ix0f, 0, W - 1).astype(jnp.int32)
    ix1 = jnp.clip(ix0f + 1, 0, W - 1).astype(jnp.int32)
    iy0 = jnp.clip(iy0f, 0, H - 1).astype(jnp.int32)
    iy1 = jnp.clip(iy0f + 1, 0, H - 1).astype(jnp.int32)

    def gather(iy_, ix_):
        return jax.vmap(lambda tb, iyb, ixb: tb[:, iyb, ixb])(t, iy_, ix_)

    v00 = gather(iy0, ix0)
    v01 = gather(iy0, ix1)
    v10 = gather(iy1, ix0)
    v11 = gather(iy1, ix1)

    w00 = (wy0 * wx0)[:, None]
    w01 = (wy0 * wx1)[:, None]
    w10 = (wy1 * wx0)[:, None]
    w11 = (wy1 * wx1)[:, None]
    return v00 * w00 + v01 * w01 + v10 * w10 + v11 * w11


def _sample(t, coords):
    # torch: F.grid_sample(t, coords.permute(0, 2, 1, 3), 'border', align_corners=True)
    return _grid_sample_bilinear(t, jnp.transpose(coords, (0, 2, 1, 3)))


def _super_perm(size, key):
    perm = jax.random.permutation(key, size)
    perm = jnp.where(perm == jnp.arange(size), perm + 1, perm)
    return perm % size


def _flat(x):  # (B, C, S, S) -> (B, C, P) float32
    return x.reshape(x.shape[0], x.shape[1], -1).astype(jnp.float32)


# ----------------------------------------------------------------------------
# Full forward pass
# ----------------------------------------------------------------------------
def contrastive_correlation_loss(
    cfg, orig_feats, orig_feats_pos, orig_code, orig_code_pos, key
):
    B, Cf = orig_feats.shape[0], orig_feats.shape[1]
    Cc = orig_code.shape[1]
    S = cfg["feature_samples"]
    P = S * S
    neg = int(cfg["neg_samples"])
    cl = cfg["corr_loss"]

    keys = jax.random.split(key, 2 + neg)
    coords1 = jax.random.uniform(keys[0], (B, S, S, 2), dtype=jnp.float32) * 2.0 - 1.0
    coords2 = jax.random.uniform(keys[1], (B, S, S, 2), dtype=jnp.float32) * 2.0 - 1.0

    feats = _sample(orig_feats, coords1)
    code = _sample(orig_code, coords1)
    feats_pos = _sample(orig_feats_pos, coords2)
    code_pos = _sample(orig_code_pos, coords2)

    # Stack the RHS of every pair along the pixel (lane) axis:
    #   pair 0 = pos_intra (feats, code), pair 1 = pos_inter, pairs 2.. = negatives.
    rhs_f_parts = [_flat(feats), _flat(feats_pos)]
    rhs_c_parts = [_flat(code), _flat(code_pos)]

    if neg > 0:
        perms = jnp.stack([_super_perm(B, keys[2 + i]) for i in range(neg)])  # (neg, B)
        feats_neg = jax.vmap(_sample, in_axes=(0, None))(orig_feats[perms], coords2)
        code_neg = jax.vmap(_sample, in_axes=(0, None))(orig_code[perms], coords2)
        fneg = jnp.transpose(feats_neg.reshape(neg, B, Cf, P), (1, 2, 0, 3))
        cneg = jnp.transpose(code_neg.reshape(neg, B, Cc, P), (1, 2, 0, 3))
        rhs_f_parts.append(fneg.reshape(B, Cf, neg * P).astype(jnp.float32))
        rhs_c_parts.append(cneg.reshape(B, Cc, neg * P).astype(jnp.float32))

    rhs_f = jnp.concatenate(rhs_f_parts, axis=-1)  # (B, Cf, num_pairs*P)
    rhs_c = jnp.concatenate(rhs_c_parts, axis=-1)  # (B, Cc, num_pairs*P)

    lhs_f = jnp.transpose(_flat(feats), (0, 2, 1))  # (B, P, Cf)
    lhs_c = jnp.transpose(_flat(code), (0, 2, 1))   # (B, P, Cc)

    shifts = jnp.array(
        [cl["pos_intra_shift"], cl["pos_inter_shift"]] + [cl["neg_inter_shift"]] * neg,
        dtype=jnp.float32,
    )

    loss_means = _fused_corr_loss(cfg, lhs_f, lhs_c, rhs_f, rhs_c, shifts)

    pos_intra = loss_means[0]
    pos_inter = loss_means[1]
    # torch.cat(neg_losses).mean() over equal-sized tensors == mean of per-pair means
    neg_inter = jnp.mean(loss_means[2:]) if neg > 0 else jnp.float32(0.0)

    total = (
        cl["pos_intra_weight"] * pos_intra
        + cl["pos_inter_weight"] * pos_inter
        + cl["neg_inter_weight"] * neg_inter
    )
    aux = {"self_loss": pos_intra, "knn_loss": pos_inter, "rand_loss": neg_inter}
    return total, aux


# ----------------------------------------------------------------------------
if __name__ == "__main__":
    cfg = {
        "pointwise": True,
        "zero_clamp": True,
        "stabilize": True,
        "feature_samples": 8,
        "neg_samples": 2,
        "corr_loss": {
            "pos_intra_shift": 0.18,
            "pos_intra_weight": 1.0,
            "pos_inter_shift": 0.12,
            "pos_inter_weight": 1.0,
            "neg_inter_shift": 0.46,
            "neg_inter_weight": 1.0,
        },
    }

    key = jax.random.PRNGKey(0)
    k1, k2, k3, k4, kfwd = jax.random.split(key, 5)

    B, Cf, Cc, H, W = 2, 32, 4, 16, 16
    orig_feats = jax.random.normal(k1, (B, Cf, H, W), dtype=jnp.float32)
    orig_feats_pos = jax.random.normal(k2, (B, Cf, H, W), dtype=jnp.float32)
    orig_code = jax.random.normal(k3, (B, Cc, H, W), dtype=jnp.float32)
    orig_code_pos = jax.random.normal(k4, (B, Cc, H, W), dtype=jnp.float32)

    loss_fn = jax.jit(functools.partial(contrastive_correlation_loss, cfg))
    total, aux = loss_fn(orig_feats, orig_feats_pos, orig_code, orig_code_pos, kfwd)
    jax.block_until_ready(total)
    jax.block_until_ready(aux["rand_loss"])
    print("KERNEL_OK")
</pallas_src>

<mosaic_0001>
module attributes {stable_mosaic.version = 11 : i64} {
  func.func @_fused_corr_loss_kernel(%arg0: i32, %arg1: memref<1x64x32xf32, #tpu.memory_space<vmem>>, %arg2: memref<1x64x4xf32, #tpu.memory_space<vmem>>, %arg3: memref<1x32x256xf32, #tpu.memory_space<vmem>>, %arg4: memref<1x4x256xf32, #tpu.memory_space<vmem>>, %arg5: memref<1x3x256xf32, #tpu.memory_space<vmem>>) attributes {dimension_semantics = [#tpu.dimension_semantics<parallel>], iteration_bounds = array<i64: 2>, scalar_prefetch = 0 : i64, scratch_operands = 0 : i64, tpu.core_type = #tpu.core_type<tc>, window_params = [{transform_indices = @transform_0, window_bounds = array<i64: 1, 64, 32>}, {transform_indices = @transform_1, window_bounds = array<i64: 1, 64, 4>}, {transform_indices = @transform_2, window_bounds = array<i64: 1, 32, 256>}, {transform_indices = @transform_3, window_bounds = array<i64: 1, 4, 256>}, {transform_indices = @transform_4, window_bounds = array<i64: 1, 3, 256>}]} {
    %c0 = arith.constant 0 : index
    %c0_0 = arith.constant 0 : index
    %c0_1 = arith.constant 0 : index
    %0 = vector.load %arg1[%c0, %c0_0, %c0_1] : memref<1x64x32xf32, #tpu.memory_space<vmem>>, vector<1x64x32xf32>
    %1 = vector.shape_cast %0 : vector<1x64x32xf32> to vector<64x32xf32>
    %2 = arith.mulf %1, %1 : vector<64x32xf32>
    %cst = arith.constant dense<0.000000e+00> : vector<64xf32>
    %3 = vector.multi_reduction <add>, %2, %cst [1] : vector<64x32xf32> to vector<64xf32>
    %4 = vector.shape_cast %3 : vector<64xf32> to vector<64x1xf32>
    %cst_2 = arith.constant 9.99999968E-21 : f32
    %5 = vector.broadcast %cst_2 : f32 to vector<64x1xf32>
    %6 = arith.maximumf %4, %5 : vector<64x1xf32>
    %7 = math.rsqrt %6 : vector<64x1xf32>
    %8 = vector.broadcast %7 : vector<64x1xf32> to vector<64x32xf32>
    %9 = arith.mulf %1, %8 : vector<64x32xf32>
    %c0_3 = arith.constant 0 : index
    %c0_4 = arith.constant 0 : index
    %c0_5 = arith.constant 0 : index
    %10 = vector.load %arg2[%c0_3, %c0_4, %c0_5] : memref<1x64x4xf32, #tpu.memory_space<vmem>>, vector<1x64x4xf32>
    %11 = vector.shape_cast %10 : vector<1x64x4xf32> to vector<64x4xf32>
    %12 = arith.mulf %11, %11 : vector<64x4xf32>
    %cst_6 = arith.constant dense<0.000000e+00> : vector<64xf32>
    %13 = vector.multi_reduction <add>, %12, %cst_6 [1] : vector<64x4xf32> to vector<64xf32>
    %14 = vector.shape_cast %13 : vector<64xf32> to vector<64x1xf32>
    %cst_7 = arith.constant 9.99999968E-21 : f32
    %15 = vector.broadcast %cst_7 : f32 to vector<64x1xf32>
    %16 = arith.maximumf %14, %15 : vector<64x1xf32>
    %17 = math.rsqrt %16 : vector<64x1xf32>
    %18 = vector.broadcast %17 : vector<64x1xf32> to vector<64x4xf32>
    %19 = arith.mulf %11, %18 : vector<64x4xf32>
    %c0_8 = arith.constant 0 : index
    %c0_9 = arith.constant 0 : index
    %c0_10 = arith.constant 0 : index
    %20 = vector.load %arg3[%c0_8, %c0_9, %c0_10] : memref<1x32x256xf32, #tpu.memory_space<vmem>>, vector<1x32x256xf32>
    %21 = vector.shape_cast %20 : vector<1x32x256xf32> to vector<32x256xf32>
    %22 = arith.mulf %21, %21 : vector<32x256xf32>
    %cst_11 = arith.constant dense<0.000000e+00> : vector<256xf32>
    %23 = vector.multi_reduction <add>, %22, %cst_11 [0] : vector<32x256xf32> to vector<256xf32>
    %24 = vector.shape_cast %23 : vector<256xf32> to vector<1x256xf32>
    %cst_12 = arith.constant 9.99999968E-21 : f32
    %25 = vector.broadcast %cst_12 : f32 to vector<1x256xf32>
    %26 = arith.maximumf %24, %25 : vector<1x256xf32>
    %27 = math.rsqrt %26 : vector<1x256xf32>
    %28 = vector.broadcast %27 : vector<1x256xf32> to vector<32x256xf32>
    %29 = arith.mulf %21, %28 : vector<32x256xf32>
    %c0_13 = arith.constant 0 : index
    %c0_14 = arith.constant 0 : index
    %c0_15 = arith.constant 0 : index
    %30 = vector.load %arg4[%c0_13, %c0_14, %c0_15] : memref<1x4x256xf32, #tpu.memory_space<vmem>>, vector<1x4x256xf32>
    %31 = vector.shape_cast %30 : vector<1x4x256xf32> to vector<4x256xf32>
    %32 = arith.mulf %31, %31 : vector<4x256xf32>
    %cst_16 = arith.constant dense<0.000000e+00> : vector<256xf32>
    %33 = vector.multi_reduction <add>, %32, %cst_16 [0] : vector<4x256xf32> to vector<256xf32>
    %34 = vector.shape_cast %33 : vector<256xf32> to vector<1x256xf32>
    %cst_17 = arith.constant 9.99999968E-21 : f32
    %35 = vector.broadcast %cst_17 : f32 to vector<1x256xf32>
    %36 = arith.maximumf %34, %35 : vector<1x256xf32>
    %37 = math.rsqrt %36 : vector<1x256xf32>
    %38 = vector.broadcast %37 : vector<1x256xf32> to vector<4x256xf32>
    %39 = arith.mulf %31, %38 : vector<4x256xf32>
    %cst_18 = arith.constant dense<0.000000e+00> : vector<64x256xf32>
    %40 = tpu.matmul %9, %29, %cst_18 {dimension_numbers = #tpu.dot_dimension_numbers<[1], [0], [0], [1], [0, 0, 1, 1], [], []>} : vector<64x32xf32>, vector<32x256xf32>, vector<64x256xf32> -> vector<64x256xf32>
    %41 = vector.extract_strided_slice %19 {offsets = [0, 0], sizes = [64, 1], strides = [1, 1]} : vector<64x4xf32> to vector<64x1xf32>
    %42 = vector.extract_strided_slice %39 {offsets = [0, 0], sizes = [1, 256], strides = [1, 1]} : vector<4x256xf32> to vector<1x256xf32>
    %43 = vector.broadcast %41 : vector<64x1xf32> to vector<64x256xf32>
    %44 = vector.broadcast %42 : vector<1x256xf32> to vector<64x256xf32>
    %45 = arith.mulf %43, %44 : vector<64x256xf32>
    %46 = vector.extract_strided_slice %19 {offsets = [0, 1], sizes = [64, 1], strides = [1, 1]} : vector<64x4xf32> to vector<64x1xf32>
    %47 = vector.extract_strided_slice %39 {offsets = [1, 0], sizes = [1, 256], strides = [1, 1]} : vector<4x256xf32> to vector<1x256xf32>
    %48 = vector.broadcast %46 : vector<64x1xf32> to vector<64x256xf32>
    %49 = vector.broadcast %47 : vector<1x256xf32> to vector<64x256xf32>
    %50 = arith.mulf %48, %49 : vector<64x256xf32>
    %51 = arith.addf %45, %50 : vector<64x256xf32>
    %52 = vector.extract_strided_slice %19 {offsets = [0, 2], sizes = [64, 1], strides = [1, 1]} : vector<64x4xf32> to vector<64x1xf32>
    %53 = vector.extract_strided_slice %39 {offsets = [2, 0], sizes = [1, 256], strides = [1, 1]} : vector<4x256xf32> to vector<1x256xf32>
    %54 = vector.broadcast %52 : vector<64x1xf32> to vector<64x256xf32>
    %55 = vector.broadcast %53 : vector<1x256xf32> to vector<64x256xf32>
    %56 = arith.mulf %54, %55 : vector<64x256xf32>
    %57 = arith.addf %51, %56 : vector<64x256xf32>
    %58 = vector.extract_strided_slice %19 {offsets = [0, 3], sizes = [64, 1], strides = [1, 1]} : vector<64x4xf32> to vector<64x1xf32>
    %59 = vector.extract_strided_slice %39 {offsets = [3, 0], sizes = [1, 256], strides = [1, 1]} : vector<4x256xf32> to vector<1x256xf32>
    %60 = vector.broadcast %58 : vector<64x1xf32> to vector<64x256xf32>
    %61 = vector.broadcast %59 : vector<1x256xf32> to vector<64x256xf32>
    %62 = arith.mulf %60, %61 : vector<64x256xf32>
    %63 = arith.addf %57, %62 : vector<64x256xf32>
    %cst_19 = arith.constant 0.000000e+00 : f32
    %cst_20 = arith.constant 8.000000e-01 : f32
    %64 = vector.broadcast %cst_19 : f32 to vector<64x256xf32>
    %65 = arith.maximumf %64, %63 : vector<64x256xf32>
    %66 = vector.broadcast %cst_20 : f32 to vector<64x256xf32>
    %67 = arith.minimumf %66, %65 : vector<64x256xf32>
    %cst_21 = arith.constant dense<0.000000e+00> : vector<256xf32>
    %68 = vector.multi_reduction <add>, %67, %cst_21 [0] : vector<64x256xf32> to vector<256xf32>
    %69 = vector.shape_cast %68 : vector<256xf32> to vector<1x256xf32>
    %c0_22 = arith.constant 0 : index
    %c1 = arith.constant 1 : index
    %c0_23 = arith.constant 0 : index
    %70 = vector.load %arg5[%c0_22, %c1, %c0_23] : memref<1x3x256xf32, #tpu.memory_space<vmem>>, vector<1x1x256xf32>
    %71 = vector.shape_cast %70 : vector<1x1x256xf32> to vector<1x256xf32>
    %72 = vector.shape_cast %69 : vector<1x256xf32> to vector<1x1x256xf32>
    tpu.vector_store %arg5[%c0_22, %c1, %c0_23], %72 {strides = array<i32>} : memref<1x3x256xf32, #tpu.memory_space<vmem>>, vector<1x1x256xf32>,
    %cst_24 = arith.constant dense<0.000000e+00> : vector<256xf32>
    %73 = vector.multi_reduction <add>, %40, %cst_24 [0] : vector<64x256xf32> to vector<256xf32>
    %74 = vector.shape_cast %73 : vector<256xf32> to vector<1x256xf32>
    %c0_25 = arith.constant 0 : index
    %c2 = arith.constant 2 : index
    %c0_26 = arith.constant 0 : index
    %75 = vector.load %arg5[%c0_25, %c2, %c0_26] : memref<1x3x256xf32, #tpu.memory_space<vmem>>, vector<1x1x256xf32>
    %76 = vector.shape_cast %75 : vector<1x1x256xf32> to vector<1x256xf32>
    %77 = vector.shape_cast %74 : vector<1x256xf32> to vector<1x1x256xf32>
    tpu.vector_store %arg5[%c0_25, %c2, %c0_26], %77 {strides = array<i32>} : memref<1x3x256xf32, #tpu.memory_space<vmem>>, vector<1x1x256xf32>,
    %78 = vector.extract_strided_slice %40 {offsets = [0, 0], sizes = [64, 64], strides = [1, 1]} : vector<64x256xf32> to vector<64x64xf32>
    %cst_27 = arith.constant dense<0.000000e+00> : vector<64xf32>
    %79 = vector.multi_reduction <add>, %78, %cst_27 [1] : vector<64x64xf32> to vector<64xf32>
    %80 = vector.shape_cast %79 : vector<64xf32> to vector<64x1xf32>
    %cst_28 = arith.constant 1.562500e-02 : f32
    %81 = vector.broadcast %cst_28 : f32 to vector<64x1xf32>
    %82 = arith.mulf %80, %81 : vector<64x1xf32>
    %83 = vector.extract_strided_slice %67 {offsets = [0, 0], sizes = [64, 64], strides = [1, 1]} : vector<64x256xf32> to vector<64x64xf32>
    %84 = vector.broadcast %82 : vector<64x1xf32> to vector<64x64xf32>
    %85 = arith.subf %78, %84 : vector<64x64xf32>
    %86 = arith.mulf %83, %85 : vector<64x64xf32>
    %cst_29 = arith.constant dense<0.000000e+00> : vector<64xf32>
    %87 = vector.multi_reduction <add>, %86, %cst_29 [0] : vector<64x64xf32> to vector<64xf32>
    %88 = vector.shape_cast %87 : vector<64xf32> to vector<1x64xf32>
    %c0_30 = arith.constant 0 : index
    %c0_31 = arith.constant 0 : index
    %c0_32 = arith.constant 0 : index
    %89 = vector.load %arg5[%c0_30, %c0_31, %c0_32] : memref<1x3x256xf32, #tpu.memory_space<vmem>>, vector<1x1x64xf32>
    %90 = vector.shape_cast %89 : vector<1x1x64xf32> to vector<1x64xf32>
    %91 = vector.shape_cast %88 : vector<1x64xf32> to vector<1x1x64xf32>
    tpu.vector_store %arg5[%c0_30, %c0_31, %c0_32], %91 {strides = array<i32>} : memref<1x3x256xf32, #tpu.memory_space<vmem>>, vector<1x1x64xf32>,
    %92 = vector.extract_strided_slice %40 {offsets = [0, 64], sizes = [64, 64], strides = [1, 1]} : vector<64x256xf32> to vector<64x64xf32>
    %cst_33 = arith.constant dense<0.000000e+00> : vector<64xf32>
    %93 = vector.multi_reduction <add>, %92, %cst_33 [1] : vector<64x64xf32> to vector<64xf32>
    %94 = vector.shape_cast %93 : vector<64xf32> to vector<64x1xf32>
    %cst_34 = arith.constant 1.562500e-02 : f32
    %95 = vector.broadcast %cst_34 : f32 to vector<64x1xf32>
    %96 = arith.mulf %94, %95 : vector<64x1xf32>
    %97 = vector.extract_strided_slice %67 {offsets = [0, 64], sizes = [64, 64], strides = [1, 1]} : vector<64x256xf32> to vector<64x64xf32>
    %98 = vector.broadcast %96 : vector<64x1xf32> to vector<64x64xf32>
    %99 = arith.subf %92, %98 : vector<64x64xf32>
    %100 = arith.mulf %97, %99 : vector<64x64xf32>
    %cst_35 = arith.constant dense<0.000000e+00> : vector<64xf32>
    %101 = vector.multi_reduction <add>, %100, %cst_35 [0] : vector<64x64xf32> to vector<64xf32>
    %102 = vector.shape_cast %101 : vector<64xf32> to vector<1x64xf32>
    %c0_36 = arith.constant 0 : index
    %c0_37 = arith.constant 0 : index
    %c64 = arith.constant 64 : index
    %103 = vector.load %arg5[%c0_36, %c0_37, %c64] : memref<1x3x256xf32, #tpu.memory_space<vmem>>, vector<1x1x64xf32>
    %104 = vector.shape_cast %103 : vector<1x1x64xf32> to vector<1x64xf32>
    %105 = vector.shape_cast %102 : vector<1x64xf32> to vector<1x1x64xf32>
    tpu.vector_store %arg5[%c0_36, %c0_37, %c64], %105 {strides = array<i32>} : memref<1x3x256xf32, #tpu.memory_space<vmem>>, vector<1x1x64xf32>,
    %106 = vector.extract_strided_slice %40 {offsets = [0, 128], sizes = [64, 64], strides = [1, 1]} : vector<64x256xf32> to vector<64x64xf32>
    %cst_38 = arith.constant dense<0.000000e+00> : vector<64xf32>
    %107 = vector.multi_reduction <add>, %106, %cst_38 [1] : vector<64x64xf32> to vector<64xf32>
    %108 = vector.shape_cast %107 : vector<64xf32> to vector<64x1xf32>
    %cst_39 = arith.constant 1.562500e-02 : f32
    %109 = vector.broadcast %cst_39 : f32 to vector<64x1xf32>
    %110 = arith.mulf %108, %109 : vector<64x1xf32>
    %111 = vector.extract_strided_slice %67 {offsets = [0, 128], sizes = [64, 64], strides = [1, 1]} : vector<64x256xf32> to vector<64x64xf32>
    %112 = vector.broadcast %110 : vector<64x1xf32> to vector<64x64xf32>
    %113 = arith.subf %106, %112 : vector<64x64xf32>
    %114 = arith.mulf %111, %113 : vector<64x64xf32>
    %cst_40 = arith.constant dense<0.000000e+00> : vector<64xf32>
    %115 = vector.multi_reduction <add>, %114, %cst_40 [0] : vector<64x64xf32> to vector<64xf32>
    %116 = vector.shape_cast %115 : vector<64xf32> to vector<1x64xf32>
    %c0_41 = arith.constant 0 : index
    %c0_42 = arith.constant 0 : index
    %c128 = arith.constant 128 : index
    %117 = vector.load %arg5[%c0_41, %c0_42, %c128] : memref<1x3x256xf32, #tpu.memory_space<vmem>>, vector<1x1x64xf32>
    %118 = vector.shape_cast %117 : vector<1x1x64xf32> to vector<1x64xf32>
    %119 = vector.shape_cast %116 : vector<1x64xf32> to vector<1x1x64xf32>
    tpu.vector_store %arg5[%c0_41, %c0_42, %c128], %119 {strides = array<i32>} : memref<1x3x256xf32, #tpu.memory_space<vmem>>, vector<1x1x64xf32>,
    %120 = vector.extract_strided_slice %40 {offsets = [0, 192], sizes = [64, 64], strides = [1, 1]} : vector<64x256xf32> to vector<64x64xf32>
    %cst_43 = arith.constant dense<0.000000e+00> : vector<64xf32>
    %121 = vector.multi_reduction <add>, %120, %cst_43 [1] : vector<64x64xf32> to vector<64xf32>
    %122 = vector.shape_cast %121 : vector<64xf32> to vector<64x1xf32>
    %cst_44 = arith.constant 1.562500e-02 : f32
    %123 = vector.broadcast %cst_44 : f32 to vector<64x1xf32>
    %124 = arith.mulf %122, %123 : vector<64x1xf32>
    %125 = vector.extract_strided_slice %67 {offsets = [0, 192], sizes = [64, 64], strides = [1, 1]} : vector<64x256xf32> to vector<64x64xf32>
    %126 = vector.broadcast %124 : vector<64x1xf32> to vector<64x64xf32>
    %127 = arith.subf %120, %126 : vector<64x64xf32>
    %128 = arith.mulf %125, %127 : vector<64x64xf32>
    %cst_45 = arith.constant dense<0.000000e+00> : vector<64xf32>
    %129 = vector.multi_reduction <add>, %128, %cst_45 [0] : vector<64x64xf32> to vector<64xf32>
    %130 = vector.shape_cast %129 : vector<64xf32> to vector<1x64xf32>
    %c0_46 = arith.constant 0 : index
    %c0_47 = arith.constant 0 : index
    %c192 = arith.constant 192 : index
    %131 = vector.load %arg5[%c0_46, %c0_47, %c192] : memref<1x3x256xf32, #tpu.memory_space<vmem>>, vector<1x1x64xf32>
    %132 = vector.shape_cast %131 : vector<1x1x64xf32> to vector<1x64xf32>
    %133 = vector.shape_cast %130 : vector<1x64xf32> to vector<1x1x64xf32>
    tpu.vector_store %arg5[%c0_46, %c0_47, %c192], %133 {strides = array<i32>} : memref<1x3x256xf32, #tpu.memory_space<vmem>>, vector<1x1x64xf32>,
    return
  }
  func.func @transform_0(%arg0: i32) -> (i32, i32, i32) {
    %c0_i32 = arith.constant 0 : i32
    %c0_i32_0 = arith.constant 0 : i32
    %c0_i32_1 = arith.constant 0 : i32
    return %arg0, %c0_i32, %c0_i32_0 : i32, i32, i32
  }
  func.func @transform_1(%arg0: i32) -> (i32, i32, i32) {
    %c0_i32 = arith.constant 0 : i32
    %c0_i32_0 = arith.constant 0 : i32
    %c0_i32_1 = arith.constant 0 : i32
    return %arg0, %c0_i32, %c0_i32_0 : i32, i32, i32
  }
  func.func @transform_2(%arg0: i32) -> (i32, i32, i32) {
    %c0_i32 = arith.constant 0 : i32
    %c0_i32_0 = arith.constant 0 : i32
    %c0_i32_1 = arith.constant 0 : i32
    return %arg0, %c0_i32, %c0_i32_0 : i32, i32, i32
  }
  func.func @transform_3(%arg0: i32) -> (i32, i32, i32) {
    %c0_i32 = arith.constant 0 : i32
    %c0_i32_0 = arith.constant 0 : i32
    %c0_i32_1 = arith.constant 0 : i32
    return %arg0, %c0_i32, %c0_i32_0 : i32, i32, i32
  }
  func.func @transform_4(%arg0: i32) -> (i32, i32, i32) {
    %c0_i32 = arith.constant 0 : i32
    %c0_i32_0 = arith.constant 0 : i32
    %c0_i32_1 = arith.constant 0 : i32
    return %arg0, %c0_i32, %c0_i32_0 : i32, i32, i32
  }
}

</mosaic_0001>

<bundles_post_ra>
// kernel: contrastive_correlation_loss.3
= control target key start
LH: loop header
LB: loop body
LE: loop exit
PB: predicated region body
PF: predicated region fallthrough
CT: control target
= control target key end

     0   :  { %s1635_s15 = smov 0   ;;  %s2265_s0 = inlined_call_operand.vmem [shape: f32[2,64,32], index: 0, kind: input, shape index: {}]   ;;  %s2266_s1 = inlined_call_operand.vmem [shape: f32[2,64,4], index: 1, kind: input, shape index: {}]   ;;  %s2267_s2 = inlined_call_operand.vmem [shape: f32[2,32,256], index: 2, kind: input, shape index: {}]   ;;  %s2268_s3 = inlined_call_operand.vmem [shape: f32[2,4,256], index: 3, kind: input, shape index: {}]   ;;  %s2269_s4 = inlined_call_operand.vmem [shape: f32[2,3,256], index: 4, kind: output, shape index: {}]  }
   0x1 LB: > { %s1488_s16 = sadd.s32 4294967295, %s1601_s15   ;;  %p1492_p0 = scmp.ge.s32.totalorder %s1601_s15, 1  ;;  %s1601_s15 = sphi %s1635_s15, %s14_s15  }
   0x2   : > { %p192_p1 = scmp.lt.s32.totalorder %s1601_s15, 3 }
   0x4   : > { %p193_p2 = pnand %p1492_p0, %p192_p1 }
   0x5   : > { %p233_p3 = scmp.lt.s32.totalorder (!%p193_p2), %s1488_s16, 1  ;;  %vm274_vm0 = vcmask (!%p193_p2), 261120   ;;  %vm339_vm1 = vcmask (!%p193_p2), 31744   ;;  %vm439_vm2 = vcmask (!%p193_p2), 1043456   ;;  %s1608_s5 = smov (!%p193_p2), 64   ;;  %vm1049_vm3 = vcmask (!%p193_p2), 523264  }
   0x6   : > { %196 = sbr.rel (%p193_p2) target bundleno = 863 (0x35f), region = 36  ;;  %vm1201_vm5 = vcmask (!%p193_p2), 1048064   ;;  %vm1119_vm6 = vcmask (!%p193_p2), 516096   ;;  %vm1223_vm7 = vcmask (!%p193_p2), 1040896  }
   0xd   : > { %s2271_s16 = smov (!%p233_p3, %s1488_s16), 1 }
   0xe   : > { %s1515_s17 = sshll.u32 %s2271_s16, 6  ;;  %s1518_s27 = sshll.u32 %s2271_s16, 3 }
   0xf   : > { %s237_s20 = scalar_lea.vmem %s2265_s0, %s1515_s17  ;;  %s247_s23 = scalar_lea.vmem %s2267_s2, %s1515_s17 }
  0x10   : > { %v1649_v0 = vld [vmem:[%s237_s20 + $0x10] sm:$0xff]  ;;  %v1651_v1 = vld [vmem:[%s237_s20] sm:$0xff]  ;;  %v1659_v5 = vld [vmem:[%s237_s20 + $0x8] sm:$0xff]  ;;  %s1687_s26 = scalar_lea.vmem %s2266_s1, %s1515_s17  ;;  %s252_s30 = scalar_lea.vmem %s2268_s3, %s1518_s27 }
  0x11   : > { %v268_v2 = vmul.f32 %v1649_v0, %v1649_v0  ;;  %v266_v3 = vmul.f32 %v1651_v1, %v1651_v1  ;;  %v1657_v4 = vld [vmem:[%s237_s20 + $0x20] sm:$0xff]  ;;  %v267_v7 = vmul.f32 %v1659_v5, %v1659_v5  ;;  %v1665_v8 = vld [vmem:[%s237_s20 + $0x28] sm:$0xff]  ;;  %v1667_v9 = vld [vmem:[%s237_s20 + $0x18] sm:$0xff]  ;;  %s2077_s8 = scalar_lea.vmem %s2269_s4, %s1518_s27 }
  0x12   : > { %v270_v6 = vmul.f32 %v1657_v4, %v1657_v4  ;;  %v271_v14 = vmul.f32 %v1665_v8, %v1665_v8  ;;  %v269_v15 = vmul.f32 %v1667_v9, %v1667_v9  ;;  %v1677_v16 = vld [vmem:[%s237_s20 + $0x30] sm:$0xff]  ;;  %v1682_v17 = vld [vmem:[%s237_s20 + $0x38] sm:$0xff]  ;;  %v1691_v19 = vld [vmem:[%s247_s23 + $0x8] sm:$0xff] }
  0x13   : > { %v281_v10 = vsel %vm274_vm0, %v268_v2, 0.0  ;;  %v275_v11 = vsel %vm274_vm0, %v266_v3, 0.0  ;;  %v278_v13 = vsel %vm274_vm0, %v267_v7, 0.0  ;;  %v272_v18 = vmul.f32 %v1677_v16, %v1677_v16  ;;  %v1698_v23 = vld [vmem:[%s1687_s26 + $0x8] sm:$0xff]  ;;  %v1701_v24 = vld [vmem:[%s1687_s26] sm:$0xff]  ;;  %v1703_v25 = vld [vmem:[%s247_s23 + $0x18] sm:$0xff] }
  0x14   : > { %282 = vadd.xlane.f32.xlu1 %v281_v10  ;;  %276 = vadd.xlane.f32.xlu0 %v275_v11  ;;  %v287_v12 = vsel %vm274_vm0, %v270_v6, 0.0  ;;  %v290_v20 = vsel %vm274_vm0, %v271_v14, 0.0  ;;  %v284_v21 = vsel %vm274_vm0, %v269_v15, 0.0  ;;  %v273_v22 = vmul.f32 %v1682_v17, %v1682_v17  ;;  %v1705_v26 = vld [vmem:[%s247_s23 + $0x28] sm:$0xff]  ;;  %v1707_v27 = vld [vmem:[%s247_s23] sm:$0xff]  ;;  %v1711_v29 = vld [vmem:[%s247_s23 + $0x10] sm:$0xff] }
  0x15   : > { %v397_v28 = vmul.f32 %v1691_v19, %v1691_v19  ;;  %v1713_v30 = vld [vmem:[%s247_s23 + $0x20] sm:$0xff]  ;;  %v293_v31 = vsel %vm274_vm0, %v272_v18, 0.0  ;;  %v332_v32 = vmul.f32 %v1698_v23, %v1698_v23  ;;  %v331_v33 = vmul.f32 %v1701_v24, %v1701_v24  ;;  %v1720_v34 = vld [vmem:[%s247_s23 + $0x38] sm:$0xff]  ;;  %v1724_v36 = vld [vmem:[%s1687_s26 + $0x10] sm:$0xff] }
  0x16   : > { %v296_v35 = vsel %vm274_vm0, %v273_v22, 0.0  ;;  %v399_v37 = vmul.f32 %v1703_v25, %v1703_v25  ;;  %v401_v38 = vmul.f32 %v1705_v26, %v1705_v26  ;;  %v1730_v39 = vld [vmem:[%s247_s23 + $0x30] sm:$0xff]  ;;  %v396_v40 = vmul.f32 %v1707_v27, %v1707_v27  ;;  %v1735_v41 = vld [vmem:[%s1687_s26 + $0x18] sm:$0xff]  ;;  %v1752_v53 = vld [vmem:[%s1687_s26 + $0x20] sm:$0xff] }
  0x17   : > { %v398_v42 = vmul.f32 %v1711_v29, %v1711_v29  ;;  %v400_v43 = vmul.f32 %v1713_v30, %v1713_v30  ;;  %v403_v44 = vmul.f32 %v1720_v34, %v1720_v34  ;;  %v333_v46 = vmul.f32 %v1724_v36, %v1724_v36  ;;  %v1755_v54 = vld [vmem:[%s1687_s26 + $0x28] sm:$0xff]  ;;  %v1764_v62 = vld [vmem:[%s1687_s26 + $0x30] sm:$0xff]  ;;  %v1767_v2 = vld [vmem:[%s1687_s26 + $0x38] sm:$0xff] }
  0x18   : > { %288 = vadd.xlane.f32.xlu1 %v287_v12  ;;  %279 = vadd.xlane.f32.xlu0 %v278_v13  ;;  %v413_v45 = vadd.f32 %v399_v37, %v397_v28  ;;  %v402_v47 = vmul.f32 %v1730_v39, %v1730_v39  ;;  %v343_v49 = vsel %vm339_vm1, %v332_v32, 0.0  ;;  %v340_v50 = vsel %vm339_vm1, %v331_v33, 0.0 }
  0x19   : > { %v404_v48 = vadd.f32 %v398_v42, %v396_v40  ;;  %v334_v51 = vmul.f32 %v1735_v41, %v1735_v41  ;;  %v346_v57 = vsel %vm339_vm1, %v333_v46, 0.0  ;;  %v335_v60 = vmul.f32 %v1752_v53, %v1752_v53 }
  0x1a   : > { %v414_v52 = vadd.f32 %v413_v45, %v401_v38  ;;  %v336_v61 = vmul.f32 %v1755_v54, %v1755_v54  ;;  %v337_v7 = vmul.f32 %v1764_v62, %v1764_v62  ;;  %v338_v13 = vmul.f32 %v1767_v2, %v1767_v2 }
  0x1b   : > { %v405_v55 = vadd.f32 %v404_v48, %v400_v43  ;;  %v349_v59 = vsel %vm339_vm1, %v334_v51, 0.0  ;;  %v352_v11 = vsel %vm339_vm1, %v335_v60, 0.0  ;;  %v1603_v32 = vmov 0.0  }
  0x1c   : > { %291 = vadd.xlane.f32.xlu1 %v290_v20  ;;  %285 = vadd.xlane.f32.xlu0 %v284_v21  ;;  %v415_v56 = vadd.f32 %v414_v52, %v403_v44  ;;  %v355_v12 = vsel %vm339_vm1, %v336_v61, 0.0  ;;  %v358_v21 = vsel %vm339_vm1, %v337_v7, 0.0  ;;  %v361_v22 = vsel %vm339_vm1, %v338_v13, 0.0 }
  0x1d   : > { %v406_v58 = vadd.f32 %v405_v55, %v402_v47  ;;  %551 = vmatprep.mubr.f32.mxu0 %v1603_v32  ;;  %575 = vmatprep.mubr.f32.mxu1 %v1603_v32 }
  0x1e   : > { %v416_v63 = vrot.slane %v415_v56, 4 }
  0x1f   : > { %v407_v3 = vrot.slane %v406_v58, 4 }
  0x20   : > { %294 = vadd.xlane.f32.xlu0 %v293_v31  ;;  %297 = vadd.xlane.f32.xlu1 %v296_v35  ;;  %v417_v6 = vadd.f32 %v416_v63, %v415_v56 }
  0x21   : > { %v408_v10 = vadd.f32 %v407_v3, %v406_v58 }
  0x22   : > { %v418_v14 = vrot.slane %v417_v6, 2 }
  0x23   : > { %v409_v15 = vrot.slane %v408_v10, 2 }
  0x24   : > { %344 = vadd.xlane.f32.xlu1 %v343_v49  ;;  %341 = vadd.xlane.f32.xlu0 %v340_v50  ;;  %v419_v18 = vadd.f32 %v418_v14, %v417_v6 }
  0x25   : > { %v410_v20 = vadd.f32 %v409_v15, %v408_v10 }
  0x26   : > { %v420_v28 = vrot.slane %v419_v18, 1 }
  0x27   : > { %v411_v31 = vrot.slane %v410_v20, 1 }
  0x28   : > { %347 = vadd.xlane.f32.xlu0 %v346_v57  ;;  %350 = vadd.xlane.f32.xlu1 %v349_v59  ;;  %v421_v33 = vadd.f32 %v420_v28, %v419_v18 }
  0x29   : > { %v412_v35 = vadd.f32 %v411_v31, %v410_v20 }
  0x2a   : > { %v423_v37 = vmax.f32 %v421_v33, 1e-20 }
  0x2b   : > { %v422_v38 = vmax.f32 %v412_v35, 1e-20 }
  0x2c   : > { %353 = vadd.xlane.f32.xlu0 %v352_v11  ;;  %356 = vadd.xlane.f32.xlu1 %v355_v12  ;;  %1555 = vrsqrt.f32 %v423_v37 }
  0x2d   : > { %1557 = vrsqrt.f32 %v422_v38 }
  0x30   : > { %359 = vadd.xlane.f32.xlu0 %v358_v21  ;;  %362 = vadd.xlane.f32.xlu1 %v361_v22 }
  0x36   : > { %v1556_v40 = vpop.eup %1555 }
  0x37   : > { %v1558_v42 = vpop.eup %1557  ;;  %v427_v43 = vmul.f32 %v1556_v40, %v1691_v19  ;;  %v429_v44 = vmul.f32 %v1556_v40, %v1703_v25  ;;  %v431_v45 = vmul.f32 %v1556_v40, %v1705_v26  ;;  %v433_v46 = vmul.f32 %v1556_v40, %v1720_v34 }
  0x38   : > { %v426_v47 = vmul.f32 %v1558_v42, %v1707_v27  ;;  %v428_v48 = vmul.f32 %v1558_v42, %v1711_v29  ;;  %v430_v49 = vmul.f32 %v1558_v42, %v1713_v30  ;;  %v432_v50 = vmul.f32 %v1558_v42, %v1730_v39 }
  0x39   : > { %v1520_v51 = vpack.c.bf16 %v429_v44, %v427_v43  ;;  %v1524_v52 = vpack.c.bf16 %v433_v46, %v431_v45  ;;  %v1604_v25 = vmov 0  }
  0x3a   : > { %v1522_v55 = vpack.c.bf16 %v428_v48, %v426_v47  ;;  %v1526_v19 = vpack.c.bf16 %v432_v50, %v430_v49  ;;  %1548 = vset.pattern.permute.xlu1 %v1604_v25  ;;  %1547 = vset.pattern.permute.xlu0 %v1604_v25 }
  0x3b   : > { %1521 = vmatprep.subr.bf16.mxu0 %v1520_v51  ;;  %1528 = vmatprep.subr.bf16.mxu1 %v1520_v51 }
  0x3c   : > { %1523 = vmatpush1.bf16.msra.mxu0 %v1522_v55  ;;  %1530 = vmatpush1.bf16.msra.mxu1 %v1522_v55 }
  0x3d   : > { %1525 = vmatprep.subr.bf16.mxu0 %v1524_v52  ;;  %1529 = vmatprep.subr.bf16.mxu1 %v1524_v52 }
  0x40   : > { %1527 = vmatpush1.bf16.msra.mxu0 %v1526_v19  ;;  %1531 = vmatpush1.bf16.msra.mxu1 %v1526_v19 }
  0xa1   : > { %v283_v26 = vpop.xlane.xlu1 %282  ;;  %v277_v27 = vpop.xlane.xlu0 %276 }
  0xa2   : > { %v299_v29 = vmax.f32 %v277_v27, 1e-20  ;;  %v301_v57 = vmax.f32 %v283_v26, 1e-20  ;;  %v1605_v27 = vmov 1  }
  0xa4   : > { %1559 = vrsqrt.f32 %v299_v29 }
  0xa5   : > { %v289_v30 = vpop.xlane.xlu1 %288  ;;  %v280_v34 = vpop.xlane.xlu0 %279 }
  0xa6   : > { %v303_v39 = vmax.f32 %v289_v30, 1e-20  ;;  %v300_v56 = vmax.f32 %v280_v34, 1e-20 }
  0xa8   : > { %1561 = vrsqrt.f32 %v303_v39 }
  0xa9   : > { %1563 = vrsqrt.f32 %v300_v56  ;;  %v292_v58 = vpop.xlane.xlu1 %291  ;;  %v286_v59 = vpop.xlane.xlu0 %285 }
  0xaa   : > { %v304_v60 = vmax.f32 %v292_v58, 1e-20  ;;  %v302_v61 = vmax.f32 %v286_v59, 1e-20  ;;  %1565 = vrsqrt.f32 %v301_v57 }
  0xac   : > { %1567 = vrsqrt.f32 %v304_v60 }
  0xad   : > { %1569 = vrsqrt.f32 %v302_v61  ;;  %v295_v63 = vpop.xlane.xlu0 %294  ;;  %v298_v3 = vpop.xlane.xlu1 %297 }
  0xae   : > { %v305_v6 = vmax.f32 %v295_v63, 1e-20  ;;  %v306_v7 = vmax.f32 %v298_v3, 1e-20  ;;  %v1560_v10 = vpop.eup %1559 }
  0xaf   : > { %v315_v11 = vmul.f32 %v1560_v10, %v1651_v1 }
  0xb0   : > { %1571 = vrsqrt.f32 %v305_v6 }
  0xb1   : > { %1573 = vrsqrt.f32 %v306_v7  ;;  %v345_v12 = vpop.xlane.xlu1 %344  ;;  %v342_v13 = vpop.xlane.xlu0 %341  ;;  %1503 = vmatmul.mubr.msk.f32.vlgmr.msra.gmra.mrb[0].mxu0 %vm274_vm0, %v315_v11 }
  0xb2   : > { %v1562_v14 = vpop.eup %1561  ;;  %v365_v15 = vmax.f32 %v345_v12, 1e-20  ;;  %v364_v18 = vmax.f32 %v342_v13, 1e-20  ;;  %557 = vmatprep.mubr.f32.mxu0 %v1603_v32 }
  0xb3   : > { %v1564_v20 = vpop.eup %1563  ;;  %v319_v21 = vmul.f32 %v1562_v14, %v1657_v4 }
  0xb4   : > { %v316_v22 = vmul.f32 %v1564_v20, %v1659_v5  ;;  %1575 = vrsqrt.f32 %v365_v15  ;;  %v1566_v28 = vpop.eup %1565  ;;  %v641_v20 = vlaneseq }
  0xb5   : > { %1507 = vmatmul.mubr.msk.f32.vlgmr.msra.gmra.mrb[0].mxu1 %vm274_vm0, %v319_v21  ;;  %1577 = vrsqrt.f32 %v364_v18  ;;  %v348_v1 = vpop.xlane.xlu0 %347  ;;  %v351_v31 = vpop.xlane.xlu1 %350  ;;  %v317_v5 = vmul.f32 %v1566_v28, %v1649_v0 }
  0xb6   : > { %v1568_v33 = vpop.eup %1567  ;;  %1504 = vmatmul.mubr.msk.f32.gmra.mrb[2].mxu0 %vm274_vm0, %v316_v22  ;;  %581 = vmatprep.mubr.f32.mxu1 %v1603_v32  ;;  %v366_v35 = vmax.f32 %v348_v1, 1e-20  ;;  %v367_v37 = vmax.f32 %v351_v31, 1e-20  ;;  %v1824_v28 = vshrl.u32 %v641_v20, 7  ;;  %vm999_vm4 = vcmp.lt.s32.totalorder %v641_v20, 256 }
  0xb7   : > { %v1570_v38 = vpop.eup %1569  ;;  %563 = vmatprep.mubr.f32.mxu0 %v1603_v32  ;;  %v320_v4 = vmul.f32 %v1568_v33, %v1665_v8 }
  0xb8   : > { %1579 = vrsqrt.f32 %v366_v35  ;;  %v318_v44 = vmul.f32 %v1570_v38, %v1667_v9  ;;  %v643_v31 = vsub.s32 0, %v1824_v28  ;;  %v647_v33 = vsub.s32 4, %v1824_v28 }
  0xb9   : > { %1508 = vmatmul.mubr.msk.f32.gmra.mrb[2].mxu1 %vm274_vm0, %v320_v4  ;;  %1581 = vrsqrt.f32 %v367_v37  ;;  %v354_v40 = vpop.xlane.xlu0 %353  ;;  %v357_v42 = vpop.xlane.xlu1 %356  ;;  %v709_v38 = vsub.s32 1, %v1824_v28  ;;  %v713_v4 = vsub.s32 5, %v1824_v28 }
  0xba   : > { %v1572_v43 = vpop.eup %1571  ;;  %1505 = vmatmul.mubr.msk.f32.gmra.mrb[4].mxu0 %vm274_vm0, %v317_v5  ;;  %587 = vmatprep.mubr.f32.mxu1 %v1603_v32  ;;  %v368_v45 = vmax.f32 %v354_v40, 1e-20  ;;  %v369_v0 = vmax.f32 %v357_v42, 1e-20 }
  0xbb   : > { %v1574_v46 = vpop.eup %1573  ;;  %569 = vmatprep.mubr.f32.mxu0 %v1603_v32  ;;  %v321_v8 = vmul.f32 %v1572_v43, %v1677_v16 }
  0xbc   : > { %1583 = vrsqrt.f32 %v368_v45  ;;  %v322_v47 = vmul.f32 %v1574_v46, %v1682_v17 }
  0xbd   : > { %1509 = vmatmul.mubr.msk.f32.gmra.mrb[4].mxu1 %vm274_vm0, %v321_v8  ;;  %v360_v48 = vpop.xlane.xlu0 %359  ;;  %1585 = vrsqrt.f32 %v369_v0  ;;  %v363_v52 = vpop.xlane.xlu1 %362 }
  0xbe   : > { %v1576_v49 = vpop.eup %1575  ;;  %1506 = vmatmul.mubr.msk.f32.gmra.mrb[6].mxu0 %vm274_vm0, %v318_v44  ;;  %593 = vmatprep.mubr.f32.mxu1 %v1603_v32  ;;  %v370_v9 = vmax.f32 %v360_v48, 1e-20  ;;  %v371_v25 = vmax.f32 %v363_v52, 1e-20 }
  0xbf   : > { %v1578_v50 = vpop.eup %1577  ;;  %v381_v51 = vmul.f32 %v1576_v49, %v1698_v23 }
  0xc0   : > { %1587 = vrsqrt.f32 %v370_v9  ;;  %v380_v16 = vmul.f32 %v1578_v50, %v1701_v24 }
  0xc1   : > { %1510 = vmatmul.mubr.msk.f32.gmra.mrb[6].mxu1 %vm274_vm0, %v322_v47  ;;  %607 = vperm.xlu1 %1548, %v381_v51   ;;  %1589 = vrsqrt.f32 %v371_v25 }
  0xc2   : > { %v1580_v55 = vpop.eup %1579  ;;  %602 = vperm.xlu0 %1547, %v380_v16  }
  0xc3   : > { %v1582_v17 = vpop.eup %1581  ;;  %v382_v19 = vmul.f32 %v1580_v55, %v1724_v36 }
  0xc4   : > { %v383_v32 = vmul.f32 %v1582_v17, %v1735_v41  ;;  %v1606_v41 = vmov 2  }
  0xc5   : > { %612 = vperm.xlu1 %1548, %v382_v19  }
  0xc6   : > { %v1584_v26 = vpop.eup %1583  ;;  %1550 = vset.pattern.permute.xlu0 %v1605_v27 }
  0xc7   : > { %680 = vperm.xlu0 %1550, %v381_v51   ;;  %v1586_v23 = vpop.eup %1585  ;;  %v384_v24 = vmul.f32 %v1584_v26, %v1752_v53  ;;  %v1607_v53 = vmov 3  }
  0xc8   : > { %v385_v30 = vmul.f32 %v1586_v23, %v1755_v54  ;;  %v434_v54 = vld [vmem:[%s252_s30] sm:$0xff] }
  0xc9   : > { %617 = vperm.xlu1 %1548, %v383_v32  }
  0xca   : > { %v1588_v29 = vpop.eup %1587 }
  0xcb   : > { %692 = vperm.xlu0 %1550, %v384_v24   ;;  %v386_v36 = vmul.f32 %v1588_v29, %v1764_v62  ;;  %v1590_v34 = vpop.eup %1589  ;;  %v435_v62 = vmul.f32 %v434_v54, %v434_v54 }
  0xcc   : > { %v387_v39 = vmul.f32 %v1590_v34, %v1767_v2  ;;  %v791_v34 = vsub.s32 2, %v1824_v28 }
  0xcd   : > { %622 = vperm.xlu1 %1548, %v384_v24   ;;  %v437_v2 = vcombine.high %v435_v62, %v435_v62  ;;  %v440_v56 = vsel %vm439_vm2, %v435_v62, 0.0 }
  0xce   : > { %v441_v58 = vrot.slane %v440_v56, 4 }
  0xcf   : > { %700 = vperm.xlu0 %1550, %v386_v36   ;;  %v447_v57 = vsel %vm439_vm2, %v437_v2, 0.0 }
  0xd0   : > { %v448_v59 = vrot.slane %v447_v57, 4  ;;  %v442_v60 = vadd.f32 %v441_v58, %v440_v56 }
  0xd1   : > { %627 = vperm.xlu1 %1548, %v385_v30  }
  0xd2   : > { %v449_v61 = vadd.f32 %v448_v59, %v447_v57  ;;  %v443_v63 = vrot.slane %v442_v60, 2 }
  0xd3   : > { %1551 = vset.pattern.permute.xlu0 %v1606_v41 }
  0xd4   : > { %758 = vperm.xlu0 %1551, %v380_v16   ;;  %v450_v3 = vrot.slane %v449_v61, 2  ;;  %v444_v6 = vadd.f32 %v443_v63, %v442_v60 }
  0xd5   : > { %632 = vperm.xlu1 %1548, %v386_v36  }
  0xd6   : > { %v451_v7 = vadd.f32 %v450_v3, %v449_v61  ;;  %v445_v10 = vrot.slane %v444_v6, 1 }
  0xd8   : > { %770 = vperm.xlu0 %1551, %v383_v32   ;;  %v452_v11 = vrot.slane %v451_v7, 1  ;;  %v446_v12 = vadd.f32 %v445_v10, %v444_v6 }
  0xd9   : > { %637 = vperm.xlu1 %1548, %v387_v39  }
  0xda   : > { %v453_v13 = vadd.f32 %v452_v11, %v451_v7  ;;  %v454_v14 = vmax.f32 %v446_v12, 1e-20 }
  0xdc   : > { %778 = vperm.xlu0 %1551, %v385_v30   ;;  %v455_v15 = vmax.f32 %v453_v13, 1e-20  ;;  %1591 = vrsqrt.f32 %v454_v14 }
  0xdd   : > { %1549 = vset.pattern.permute.xlu1 %v1605_v27 }
  0xde   : > { %676 = vperm.xlu1 %1549, %v380_v16   ;;  %1593 = vrsqrt.f32 %v455_v15 }
  0xe0   : > { %786 = vperm.xlu0 %1551, %v387_v39  }
  0xe2   : > { %684 = vperm.xlu1 %1549, %v382_v19  }
  0xe4   : > { %1554 = vset.pattern.permute.xlu0 %v1607_v53 }
  0xe5   : > { %844 = vperm.xlu0 %1554, %v381_v51  }
  0xe6   : > { %688 = vperm.xlu1 %1549, %v383_v32   ;;  %v1592_v18 = vpop.eup %1591 }
  0xe8   : > { %v1594_v21 = vpop.eup %1593 }
  0xe9   : > { %856 = vperm.xlu0 %1554, %v384_v24   ;;  %v460_v22 = vcombine.low %v1592_v18, %v1594_v21 }
  0xea   : > { %696 = vperm.xlu1 %1549, %v385_v30  }
  0xeb   : > { %v462_v1 = vmul.f32 %v460_v22, %v434_v54 }
  0xed   : > { %864 = vperm.xlu0 %1554, %v386_v36   ;;  %v644_v35 = vrot.slane %v462_v1, %v643_v31  ;;  %v648_v37 = vrot.slane %v462_v1, %v647_v33  ;;  %v710_v42 = vrot.slane %v462_v1, %v709_v38  ;;  %v714_v43 = vrot.slane %v462_v1, %v713_v4 }
  0xee   : > { %704 = vperm.xlu1 %1549, %v387_v39   ;;  %v792_v2 = vrot.slane %v462_v1, %v791_v34 }
  0xef   : > { %v1830_v5 = vrot.slane %v644_v35, %v643_v31  ;;  %v1832_v40 = vrot.slane %v648_v37, %v643_v31  ;;  %v1836_v0 = vrot.slane %v710_v42, %v709_v38  ;;  %v1838_v47 = vrot.slane %v714_v43, %v709_v38 }
  0xf0   : > { %v1856_v60 = vrot.slane %v792_v2, %v791_v34 }
  0xf2   : > { %1552 = vset.pattern.permute.xlu1 %v1606_v41  ;;  %v795_v41 = vsub.s32 6, %v1824_v28 }
  0xf3   : > { %762 = vperm.xlu1 %1552, %v381_v51  }
  0xf4   : > { %v796_v56 = vrot.slane %v462_v1, %v795_v41 }
  0xf6   : > { %v1858_v61 = vrot.slane %v796_v56, %v791_v34 }
  0xf7   : > { %766 = vperm.xlu1 %1552, %v382_v19  }
  0xfb   : > { %774 = vperm.xlu1 %1552, %v384_v24  }
  0xff   : > { %782 = vperm.xlu1 %1552, %v386_v36  }
 0x103   : > { %1553 = vset.pattern.permute.xlu1 %v1607_v53  ;;  %v877_v53 = vsub.s32 7, %v1824_v28 }
 0x104   : > { %840 = vperm.xlu1 %1553, %v380_v16  }
 0x105   : > { %v878_v58 = vrot.slane %v462_v1, %v877_v53 }
 0x108   : > { %848 = vperm.xlu1 %1553, %v382_v19  }
 0x10c   : > { %852 = vperm.xlu1 %1553, %v383_v32  }
 0x110   : > { %860 = vperm.xlu1 %1553, %v385_v30  }
 0x114   : > { %868 = vperm.xlu1 %1553, %v387_v39   ;;  %v873_v39 = vsub.s32 3, %v1824_v28 }
 0x116   : > { %v874_v57 = vrot.slane %v462_v1, %v873_v39  ;;  %v1862_v3 = vrot.slane %v878_v58, %v873_v39 }
 0x118   : > { %v1860_v63 = vrot.slane %v874_v57, %v873_v39 }
 0x140   : > { %v608_v44 = vpop.permute.xlu1 %607 }
 0x141   : > { %v661_v45 = vmul.f32 %v1830_v5, %v608_v44  ;;  %v662_v46 = vmul.f32 %v1832_v40, %v608_v44  ;;  %v603_v8 = vpop.permute.xlu0 %602 }
 0x142   : > { %v659_v11 = vmul.f32 %v1830_v5, %v603_v8  ;;  %v660_v12 = vmul.f32 %v1832_v40, %v603_v8 }
 0x144   : > { %v613_v48 = vpop.permute.xlu1 %612 }
 0x145   : > { %v663_v7 = vmul.f32 %v1830_v5, %v613_v48  ;;  %v664_v10 = vmul.f32 %v1832_v40, %v613_v48 }
 0x146   : > { %v681_v49 = vpop.permute.xlu0 %680 }
 0x147   : > { %v727_v9 = vmul.f32 %v1836_v0, %v681_v49  ;;  %v728_v50 = vmul.f32 %v1838_v47, %v681_v49 }
 0x148   : > { %v618_v51 = vpop.permute.xlu1 %617 }
 0x149   : > { %v743_v16 = vadd.f32 %v727_v9, %v661_v45  ;;  %v744_v52 = vadd.f32 %v728_v50, %v662_v46  ;;  %v665_v35 = vmul.f32 %v1830_v5, %v618_v51  ;;  %v666_v8 = vmul.f32 %v1832_v40, %v618_v51 }
 0x14a   : > { %v693_v17 = vpop.permute.xlu0 %692 }
 0x14b   : > { %v733_v31 = vmul.f32 %v1836_v0, %v693_v17  ;;  %v734_v33 = vmul.f32 %v1838_v47, %v693_v17 }
 0x14c   : > { %v623_v55 = vpop.permute.xlu1 %622 }
 0x14d   : > { %v667_v22 = vmul.f32 %v1830_v5, %v623_v55  ;;  %v668_v1 = vmul.f32 %v1832_v40, %v623_v55 }
 0x14e   : > { %v701_v25 = vpop.permute.xlu0 %700 }
 0x14f   : > { %v737_v4 = vmul.f32 %v1836_v0, %v701_v25  ;;  %v738_v45 = vmul.f32 %v1838_v47, %v701_v25  ;;  %v750_v55 = vadd.f32 %v734_v33, %v668_v1 }
 0x150   : > { %v628_v19 = vpop.permute.xlu1 %627 }
 0x151   : > { %v669_v50 = vmul.f32 %v1830_v5, %v628_v19  ;;  %v670_v17 = vmul.f32 %v1832_v40, %v628_v19 }
 0x153   : > { %v759_v27 = vpop.permute.xlu0 %758 }
 0x154   : > { %v633_v32 = vpop.permute.xlu1 %632  ;;  %v807_v25 = vmul.f32 %v1856_v60, %v759_v27  ;;  %v808_v51 = vmul.f32 %v1858_v61, %v759_v27 }
 0x155   : > { %v671_v42 = vmul.f32 %v1830_v5, %v633_v32  ;;  %v672_v43 = vmul.f32 %v1832_v40, %v633_v32 }
 0x157   : > { %v1844_v24 = vpop.permute.xlu0 %770  ;;  %v753_v41 = vadd.f32 %v737_v4, %v671_v42  ;;  %v754_v39 = vadd.f32 %v738_v45, %v672_v43 }
 0x158   : > { %v1842_v26 = vpop.permute.xlu1 %637  ;;  %v813_v2 = vmul.f32 %v1856_v60, %v1844_v24  ;;  %v814_v19 = vmul.f32 %v1858_v61, %v1844_v24 }
 0x159   : > { %v674_v27 = vmul.f32 %v1832_v40, %v1842_v26 }
 0x15b   : > { %v1846_v30 = vpop.permute.xlu0 %778 }
 0x15c   : > { %v818_v24 = vmul.f32 %v1858_v61, %v1846_v30 }
 0x15d   : > { %v677_v23 = vpop.permute.xlu1 %676 }
 0x15e   : > { %v725_v44 = vmul.f32 %v1836_v0, %v677_v23  ;;  %v726_v48 = vmul.f32 %v1838_v47, %v677_v23 }
 0x15f   : > { %v1852_v62 = vpop.permute.xlu0 %786 }
 0x160   : > { %v741_v23 = vadd.f32 %v725_v44, %v659_v11  ;;  %v742_v58 = vadd.f32 %v726_v48, %v660_v12  ;;  %v1917_v40 = vmul.f32 %v1858_v61, %v1852_v62 }
 0x161   : > { %v685_v29 = vpop.permute.xlu1 %684 }
 0x162   : > { %v729_v56 = vmul.f32 %v1836_v0, %v685_v29  ;;  %v730_v57 = vmul.f32 %v1838_v47, %v685_v29  ;;  %v817_v29 = vmul.f32 %v1856_v60, %v1846_v30  ;;  %v823_v12 = vadd.f32 %v807_v25, %v741_v23 }
 0x164   : > { %v845_v6 = vpop.permute.xlu0 %844 }
 0x165   : > { %v689_v36 = vpop.permute.xlu1 %688  ;;  %v891_v18 = vmul.f32 %v1860_v63, %v845_v6  ;;  %v892_v21 = vmul.f32 %v1862_v3, %v845_v6 }
 0x166   : > { %v732_v32 = vmul.f32 %v1838_v47, %v689_v36 }
 0x168   : > { %v857_v34 = vpop.permute.xlu0 %856 }
 0x169   : > { %v697_v54 = vpop.permute.xlu1 %696  ;;  %v898_v30 = vmul.f32 %v1862_v3, %v857_v34 }
 0x16a   : > { %v735_v11 = vmul.f32 %v1836_v0, %v697_v54 }
 0x16c   : > { %v865_v1 = vpop.permute.xlu0 %864 }
 0x16d   : > { %v1854_v59 = vpop.permute.xlu1 %704  ;;  %v901_v42 = vmul.f32 %v1860_v63, %v865_v1  ;;  %v902_v43 = vmul.f32 %v1862_v3, %v865_v1 }
 0x172   : > { %v763_v13 = vpop.permute.xlu1 %762 }
 0x173   : > { %v809_v14 = vmul.f32 %v1856_v60, %v763_v13  ;;  %v810_v15 = vmul.f32 %v1858_v61, %v763_v13  ;;  %v748_v13 = vadd.f32 %v732_v32, %v666_v8 }
 0x175   : > { %v825_v37 = vadd.f32 %v809_v14, %v743_v16  ;;  %v826_v38 = vadd.f32 %v810_v15, %v744_v52  ;;  %v731_v16 = vmul.f32 %v1836_v0, %v689_v36  ;;  %v749_v52 = vadd.f32 %v733_v31, %v667_v22 }
 0x176   : > { %v767_v46 = vpop.permute.xlu1 %766  ;;  %v673_v36 = vmul.f32 %v1830_v5, %v1842_v26  ;;  %v736_v14 = vmul.f32 %v1838_v47, %v697_v54  ;;  %v1913_v5 = vmul.f32 %v1856_v60, %v1852_v62  ;;  %v745_v26 = vadd.f32 %v729_v56, %v663_v7 }
 0x177   : > { %v1884_v49 = vadd.f32 %v891_v18, %v825_v37  ;;  %v1886_v9 = vadd.f32 %v892_v21, %v826_v38  ;;  %v747_v6 = vadd.f32 %v731_v16, %v665_v35  ;;  %v746_v54 = vadd.f32 %v730_v57, %v664_v10 }
 0x178   : > { %v824_v21 = vadd.f32 %v808_v51, %v742_v58  ;;  %v751_v31 = vadd.f32 %v735_v11, %v669_v50  ;;  %v897_v35 = vmul.f32 %v1860_v63, %v857_v34  ;;  %v752_v37 = vadd.f32 %v736_v14, %v670_v17 }
 0x179   : > { %v1920_v33 = vadd.f32 %v813_v2, %v747_v6  ;;  %v1924_v4 = vadd.f32 %v814_v19, %v748_v13  ;;  %v739_v7 = vmul.f32 %v1836_v0, %v1854_v59  ;;  %v811_v10 = vmul.f32 %v1856_v60, %v767_v46 }
 0x17a   : > { %v775_v53 = vpop.permute.xlu1 %774  ;;  %v812_v44 = vmul.f32 %v1858_v61, %v767_v46  ;;  %v923_v50 = vmax.f32 %v1884_v49, 0.0  ;;  %v740_v16 = vmul.f32 %v1838_v47, %v1854_v59  ;;  %v1943_v25 = vadd.f32 %v818_v24, %v752_v37 }
 0x17b   : > { %v815_v15 = vmul.f32 %v1856_v60, %v775_v53  ;;  %v816_v22 = vmul.f32 %v1858_v61, %v775_v53  ;;  %v924_v46 = vmax.f32 %v1886_v9, 0.0  ;;  %v755_v47 = vadd.f32 %v739_v7, %v673_v36 }
 0x17c   : > { %v827_v59 = vadd.f32 %v811_v10, %v745_v26  ;;  %v828_v34 = vadd.f32 %v812_v44, %v746_v54  ;;  %v1950_v2 = vmin.f32 %v923_v50, 0.8  ;;  %v756_v11 = vadd.f32 %v740_v16, %v674_v27 }
 0x17d   : > { %v831_v38 = vadd.f32 %v815_v15, %v749_v52  ;;  %v832_v45 = vadd.f32 %v816_v22, %v750_v55  ;;  %v1937_v52 = vadd.f32 %v817_v29, %v751_v31  ;;  %v1960_v13 = vmin.f32 %v924_v46, 0.8 }
 0x17e   : > { %v783_v18 = vpop.permute.xlu1 %782  ;;  %v1977_v26 = vadd.f32 %v1913_v5, %v755_v47 }
 0x17f   : > { %v819_v62 = vmul.f32 %v1856_v60, %v783_v18  ;;  %v820_v8 = vmul.f32 %v1858_v61, %v783_v18  ;;  %v913_v61 = vadd.f32 %v897_v35, %v831_v38 }
 0x181   : > { %v835_v32 = vadd.f32 %v819_v62, %v753_v41  ;;  %v836_v23 = vadd.f32 %v820_v8, %v754_v39  ;;  %v914_v41 = vadd.f32 %v898_v30, %v832_v45  ;;  %v929_v39 = vmax.f32 %v913_v61, 0.0 }
 0x183   : > { %v841_v48 = vpop.permute.xlu1 %840  ;;  %v917_v14 = vadd.f32 %v901_v42, %v835_v32  ;;  %v918_v22 = vadd.f32 %v902_v43, %v836_v23  ;;  %v930_v37 = vmax.f32 %v914_v41, 0.0  ;;  %v1991_v42 = vmin.f32 %v929_v39, 0.8 }
 0x184   : > { %v889_v0 = vmul.f32 %v1860_v63, %v841_v48  ;;  %v890_v60 = vmul.f32 %v1862_v3, %v841_v48  ;;  %v1941_v17 = vpop.f32.mrb[0].mxu0 }
 0x185   : > { %1129 = vrot.lane.b32.xlu0 %v1941_v17, %s1608_s5  ;;  %v1948_v49 = vpop.f32.mrb[1].mxu0  ;;  %v933_v48 = vmax.f32 %v917_v14, 0.0  ;;  %v934_v32 = vmax.f32 %v918_v22, 0.0 }
 0x186   : > { %v905_v55 = vadd.f32 %v889_v0, %v823_v12  ;;  %v906_v51 = vadd.f32 %v890_v60, %v824_v21 }
 0x187   : > { %v849_v53 = vpop.permute.xlu1 %848  ;;  %v2032_v39 = vmin.f32 %v933_v48, 0.8  ;;  %v2034_v14 = vmin.f32 %v934_v32, 0.8 }
 0x188   : > { %v1952_v56 = vpop.f32.mrb[0].mxu1  ;;  %v921_v9 = vmax.f32 %v905_v55, 0.0  ;;  %v922_v57 = vmax.f32 %v906_v51, 0.0  ;;  %v893_v58 = vmul.f32 %v1860_v63, %v849_v53  ;;  %v894_v19 = vmul.f32 %v1862_v3, %v849_v53 }
 0x189   : > { %v1956_v6 = vpop.f32.mrb[2].mxu0  ;;  %v1958_v36 = vpop.f32.mrb[1].mxu1  ;;  %1137 = vrot.lane.b32.xlu0 %v1952_v56, %s1608_s5  ;;  %v2018_v53 = vmin.f32 %v930_v37, 0.8 }
 0x18a   : > { %v1003_v15 = vadd.f32 %v1956_v6, %v1941_v17  ;;  %v1964_v29 = vpop.f32.mrb[3].mxu0  ;;  %1311 = vrot.lane.b32.xlu1 %v1958_v36, %s1608_s5  ;;  %v1970_v12 = vmin.f32 %v921_v9, 0.8  ;;  %v1972_v18 = vmin.f32 %v922_v57, 0.8  ;;  %v909_v27 = vadd.f32 %v893_v58, %v827_v59 }
 0x18b   : > { %v1016_v24 = vadd.f32 %v1964_v29, %v1948_v49  ;;  %v910_v54 = vadd.f32 %v894_v19, %v828_v34  ;;  %v853_v21 = vpop.permute.xlu1 %852  ;;  %v838_v34 = vadd.f32 %v1917_v40, %v756_v11  ;;  %v1228_v20 = vsel %vm1049_vm3, %v1964_v29, 0.0 }
 0x18c   : > { %v1979_v1 = vpop.f32.mrb[2].mxu1  ;;  %v925_v31 = vmax.f32 %v909_v27, 0.0  ;;  %v953_v35 = vadd.f32 %v1950_v2, %v1970_v12  ;;  %v895_v30 = vmul.f32 %v1860_v63, %v853_v21  ;;  %v966_v5 = vadd.f32 %v1960_v13, %v1972_v18 }
 0x18d   : > { %v1984_v38 = vpop.f32.mrb[4].mxu0  ;;  %v1986_v62 = vpop.f32.mrb[3].mxu1  ;;  %v926_v7 = vmax.f32 %v910_v54, 0.0  ;;  %v896_v10 = vmul.f32 %v1862_v3, %v853_v21  ;;  %1303 = vrot.lane.b32.xlu0 %v1948_v49, %s1608_s5 }
 0x18e   : > { %v1004_v43 = vadd.f32 %v1003_v15, %v1984_v38  ;;  %v1994_v44 = vpop.f32.mrb[5].mxu0  ;;  %1131 = vrot.lane.b32.xlu1 %v1956_v6, %s1608_s5  ;;  %v2000_v45 = vmin.f32 %v925_v31, 0.8  ;;  %v911_v8 = vadd.f32 %v895_v30, %v1920_v33 }
 0x18f   : > { %v1017_v50 = vadd.f32 %v1016_v24, %v1994_v44  ;;  %v2004_v16 = vmin.f32 %v926_v7, 0.8  ;;  %v912_v0 = vadd.f32 %v896_v10, %v1924_v4  ;;  %v861_v60 = vpop.permute.xlu1 %860 }
 0x190   : > { %v2007_v46 = vpop.f32.mrb[4].mxu1  ;;  %v927_v61 = vmax.f32 %v911_v8, 0.0  ;;  %v954_v47 = vadd.f32 %v953_v35, %v2000_v45  ;;  %v899_v59 = vmul.f32 %v1860_v63, %v861_v60  ;;  %v900_v55 = vmul.f32 %v1862_v3, %v861_v60 }
 0x191   : > { %v2012_v51 = vpop.f32.mrb[6].mxu0  ;;  %v2014_v33 = vpop.f32.mrb[5].mxu1  ;;  %v928_v23 = vmax.f32 %v912_v0, 0.0  ;;  %v967_v4 = vadd.f32 %v966_v5, %v2004_v16 }
 0x192   : > { %v1005_v41 = vadd.f32 %v1004_v43, %v2012_v51  ;;  %v2021_v9 = vpop.f32.mrb[7].mxu0  ;;  %1305 = vrot.lane.b32.xlu1 %v1964_v29, %s1608_s5  ;;  %v2025_v57 = vmin.f32 %v927_v61, 0.8  ;;  %v915_v58 = vadd.f32 %v899_v59, %v1937_v52  ;;  %v916_v19 = vadd.f32 %v900_v55, %v1943_v25 }
 0x193   : > { %v1018_v40 = vadd.f32 %v1017_v50, %v2021_v9  ;;  %v2030_v11 = vmin.f32 %v928_v23, 0.8  ;;  %v869_v15 = vpop.permute.xlu1 %868 }
 0x194   : > { %v1006_v27 = vadd.f32 %v1005_v41, %v1952_v56  ;;  %v2037_v24 = vpop.f32.mrb[6].mxu1  ;;  %v955_v54 = vadd.f32 %v954_v47, %v2025_v57  ;;  %v931_v21 = vmax.f32 %v915_v58, 0.0  ;;  %v932_v22 = vmax.f32 %v916_v19, 0.0 }
 0x195   : > { %v1019_v52 = vadd.f32 %v1018_v40, %v1958_v36  ;;  %v2041_v25 = vpop.f32.mrb[7].mxu1  ;;  %v968_v31 = vadd.f32 %v967_v4, %v2030_v11  ;;  %v903_v35 = vmul.f32 %v1860_v63, %v869_v15  ;;  %v904_v30 = vmul.f32 %v1862_v3, %v869_v15 }
 0x196   : > { %v1007_v37 = vadd.f32 %v1006_v27, %v1979_v1  ;;  %1313 = vrot.lane.b32.xlu1 %v1986_v62, %s1608_s5  ;;  %v956_v7 = vadd.f32 %v955_v54, %v1991_v42  ;;  %v2050_v5 = vmin.f32 %v931_v21, 0.8  ;;  %v2052_v10 = vmin.f32 %v932_v22, 0.8 }
 0x197   : > { %v1020_v43 = vadd.f32 %v1019_v52, %v1986_v62  ;;  %v969_v8 = vadd.f32 %v968_v31, %v2018_v53  ;;  %v919_v48 = vadd.f32 %v903_v35, %v1977_v26  ;;  %v920_v63 = vadd.f32 %v904_v30, %v838_v34 }
 0x198   : > { %v1008_v3 = vadd.f32 %v1007_v37, %v2007_v46  ;;  %v957_v50 = vadd.f32 %v956_v7, %v2050_v5  ;;  %v1609_v15 = vmov 1966171168  }
 0x199   : > { %v1021_v0 = vadd.f32 %v1020_v43, %v2014_v33  ;;  %v970_v60 = vadd.f32 %v969_v8, %v2052_v10  ;;  %v935_v32 = vmax.f32 %v919_v48, 0.0  ;;  %v936_v61 = vmax.f32 %v920_v63, 0.0 }
 0x19a   : > { %v1009_v47 = vadd.f32 %v1008_v3, %v2037_v24  ;;  %v958_v59 = vadd.f32 %v957_v50, %v2032_v39  ;;  %v983_v27 = vunpack.c.l.s4 %v1609_v15 }
 0x19b   : > { %v1022_v55 = vadd.f32 %v1021_v0, %v2041_v25  ;;  %v971_v23 = vadd.f32 %v970_v60, %v2034_v14  ;;  %v2065_v26 = vmin.f32 %v935_v32, 0.8  ;;  %v2067_v34 = vmin.f32 %v936_v61, 0.8 }
 0x19c   : > { %v1010_v4 = vrot.slane %v1009_v47, 4  ;;  %v984_v7 = vunpack.c.0.s8 %v983_v27  ;;  %v1225_v27 = vsel %vm1049_vm3, %v1948_v49, 0.0 }
 0x19d   : > { %v1023_v41 = vrot.slane %v1022_v55, 4  ;;  %v959_v58 = vadd.f32 %v958_v59, %v2065_v26  ;;  %v972_v19 = vadd.f32 %v971_v23, %v2067_v34 }
 0x19e   : > { %v1011_v40 = vadd.f32 %v1010_v4, %v1009_v47  ;;  %v987_v32 = vsub.s32 %v984_v7, %v1824_v28  ;;  %v1050_v28 = vsel %vm1049_vm3, %v1941_v17, 0.0 }
 0x19f   : > { %v1024_v54 = vadd.f32 %v1023_v41, %v1022_v55  ;;  %v960_v21 = vrot.slane %v959_v58, 4  ;;  %v973_v22 = vrot.slane %v972_v19, 4 }
 0x1a0   : > { %v1012_v52 = vrot.slane %v1011_v40, 2 }
 0x1a1   : > { %v1025_v31 = vrot.slane %v1024_v54, 2  ;;  %v961_v35 = vadd.f32 %v960_v21, %v959_v58  ;;  %v974_v30 = vadd.f32 %v973_v22, %v972_v19  ;;  %v1056_v21 = vsel %vm1049_vm3, %v1984_v38, 0.0 }
 0x1a2   : > { %v1013_v37 = vadd.f32 %v1012_v52, %v1011_v40  ;;  %v1231_v22 = vsel %vm1049_vm3, %v1994_v44, 0.0  ;;  %v1062_v52 = vsel %vm1049_vm3, %v1952_v56, 0.0 }
 0x1a3   : > { %v1026_v43 = vadd.f32 %v1025_v31, %v1024_v54  ;;  %v962_v8 = vrot.slane %v961_v35, 2  ;;  %v975_v48 = vrot.slane %v974_v30, 2  ;;  %v1053_v54 = vsel %vm1049_vm3, %v1956_v6, 0.0 }
 0x1a4   : > { %v1014_v63 = vrot.slane %v1013_v37, 1 }
 0x1a5   : > { %v1027_v3 = vrot.slane %v1026_v43, 1  ;;  %v963_v50 = vadd.f32 %v962_v8, %v961_v35  ;;  %v976_v0 = vadd.f32 %v975_v48, %v974_v30 }
 0x1a6   : > { %v1015_v60 = vadd.f32 %v1014_v63, %v1013_v37 }
 0x1a7   : > { %v1028_v61 = vadd.f32 %v1027_v3, %v1026_v43  ;;  %v964_v47 = vrot.slane %v963_v50, 1  ;;  %v977_v59 = vrot.slane %v976_v0, 1 }
 0x1a9   : > { %v1031_v55 = vcombine.low %v1015_v60, %v1028_v61  ;;  %v965_v23 = vadd.f32 %v964_v47, %v963_v50  ;;  %v978_v4 = vadd.f32 %v977_v59, %v976_v0 }
 0x1ab   : > { %v1038_v41 = vrot.slane %v1031_v55, %v987_v32  ;;  %v981_v58 = vcombine.low %v965_v23, %v978_v4 }
 0x1ac   : > { %1051 = vadd.xlane.f32.xlu0 %v1050_v28  ;;  %v1240_v28 = vsel %vm1049_vm3, %v1986_v62, 0.0 }
 0x1ad   : > { %v1045_v19 = vrot.slane %v1038_v41, %v987_v32  ;;  %v988_v40 = vrot.slane %v981_v58, %v987_v32  ;;  %v1237_v58 = vsel %vm1049_vm3, %v1958_v36, 0.0 }
 0x1af   : > { %1512 = vst.msk [vmem:[%s2077_s8 + $0x2] ss:$4 sm:$0x3] %vm999_vm4, %v1045_v19  ;;  %v995_v15 = vrot.slane %v988_v40, %v987_v32  ;;  %v1065_v19 = vsel %vm1049_vm3, %v1979_v1, 0.0  ;;  %v1243_v40 = vsel %vm1049_vm3, %v2014_v33, 0.0 }
 0x1b0   : > { %1226 = vadd.xlane.f32.xlu0 %v1225_v27  ;;  %v1234_v27 = vsel %vm1049_vm3, %v2021_v9, 0.0 }
 0x1b1   : > { %1511 = vst.msk [vmem:[%s2077_s8 + $0x1] ss:$4 sm:$0x3] %vm999_vm4, %v995_v15  ;;  %v1068_v15 = vsel %vm1049_vm3, %v2007_v46, 0.0 }
 0x1ba   : > { %1054 = vadd.xlane.f32.xlu1 %v1053_v54  ;;  %v1059_v54 = vsel %vm1049_vm3, %v2012_v51, 0.0 }
 0x1c6   : > { %1139 = vrot.lane.b32.xlu0 %v1979_v1, %s1608_s5 }
 0x1cb   : > { %1307 = vrot.lane.b32.xlu1 %v1994_v44, %s1608_s5 }
 0x1cf   : > { %1315 = vrot.lane.b32.xlu1 %v2014_v33, %s1608_s5 }
 0x1e5   : > { %1229 = vadd.xlane.f32.xlu0 %v1228_v20 }
 0x1f3   : > { %1057 = vadd.xlane.f32.xlu1 %v1056_v21 }
 0x1f7   : > { %v1130_v31 = vpop.permute.xlu0 %1129 }
 0x1f8   : > { %v1153_v21 = vsel %vm1049_vm3, %v1130_v31, 0.0 }
 0x1fb   : > { %1133 = vrot.lane.b32.xlu0 %v1984_v38, %s1608_s5  ;;  %v1138_v35 = vpop.permute.xlu0 %1137 }
 0x1fc   : > { %v1312_v30 = vpop.permute.xlu1 %1311 }
 0x1fd   : > { %v1339_v20 = vsel %vm1049_vm3, %v1312_v30, 0.0 }
 0x1ff   : > { %1141 = vrot.lane.b32.xlu0 %v2007_v46, %s1608_s5  ;;  %v1304_v37 = vpop.permute.xlu0 %1303 }
 0x200   : > { %v1132_v7 = vpop.permute.xlu1 %1131 }
 0x204   : > { %1309 = vrot.lane.b32.xlu1 %v2021_v9, %s1608_s5  ;;  %v1306_v48 = vpop.permute.xlu1 %1305 }
 0x208   : > { %v1314_v60 = vpop.permute.xlu1 %1313 }
 0x209   : > { %v1342_v30 = vsel %vm1049_vm3, %v1314_v60, 0.0 }
 0x21e   : > { %1232 = vadd.xlane.f32.xlu0 %v1231_v22  ;;  %v1156_v22 = vsel %vm1049_vm3, %v1132_v7, 0.0 }
 0x228   : > { %1063 = vadd.xlane.f32.xlu1 %v1062_v52  ;;  %v1165_v52 = vsel %vm1049_vm3, %v1138_v35, 0.0 }
 0x234   : > { %1135 = vrot.lane.b32.xlu0 %v2012_v51, %s1608_s5 }
 0x238   : > { %1143 = vrot.lane.b32.xlu0 %v2037_v24, %s1608_s5 }
 0x239   : > { %1317 = vrot.lane.b32.xlu1 %v2041_v25, %s1608_s5  ;;  %v1052_v43 = vpop.xlane.xlu0 %1051 }
 0x23a   : > { %v1074_v8 = vmul.f32 0.015625, %v1052_v43 }
 0x23c   : > { %v1082_v63 = vsub.f32 %v1941_v17, %v1074_v8  ;;  %v1330_v8 = vsel %vm1049_vm3, %v1306_v48, 0.0 }
 0x23d   : > { %v1227_v3 = vpop.xlane.xlu0 %1226 }
 0x23e   : > { %v1249_v50 = vmul.f32 0.015625, %v1227_v3  ;;  %v1090_v47 = vmul.f32 %v1082_v63, %v1970_v12  ;;  %v1327_v63 = vsel %vm1049_vm3, %v1304_v37, 0.0 }
 0x240   : > { %v1257_v0 = vsub.f32 %v1948_v49, %v1249_v50  ;;  %v1098_v23 = vsel %vm1049_vm3, %v1090_v47, 0.0 }
 0x241   : > { %v1140_v43 = vpop.permute.xlu0 %1139 }
 0x242   : > { %v1168_v31 = vsel %vm1049_vm3, %v1140_v43, 0.0  ;;  %v1265_v7 = vmul.f32 %v1257_v0, %v1972_v18 }
 0x244   : > { %v1273_v60 = vsel %vm1049_vm3, %v1265_v7, 0.0 }
 0x247   : > { %v1055_v32 = vpop.xlane.xlu1 %1054 }
 0x248   : > { %v1075_v61 = vmul.f32 0.015625, %v1055_v32 }
 0x24a   : > { %v1083_v59 = vsub.f32 %v1956_v6, %v1075_v61 }
 0x24b   : > { %v1308_v3 = vpop.permute.xlu1 %1307 }
 0x24c   : > { %v1091_v55 = vmul.f32 %v1083_v59, %v1950_v2  ;;  %v1333_v48 = vsel %vm1049_vm3, %v1308_v3, 0.0 }
 0x24e   : > { %v1099_v4 = vsel %vm1049_vm3, %v1091_v55, 0.0 }
 0x24f   : > { %v1100_v41 = vadd.f32 %v1099_v4, %v1098_v23  ;;  %v1316_v47 = vpop.permute.xlu1 %1315 }
 0x250   : > { %v1345_v0 = vsel %vm1049_vm3, %v1316_v47, 0.0 }
 0x257   : > { %1238 = vadd.xlane.f32.xlu0 %v1237_v58 }
 0x25b   : > { %1241 = vadd.xlane.f32.xlu0 %v1240_v28 }
 0x25d   : > { %1066 = vadd.xlane.f32.xlu1 %v1065_v19 }
 0x25f   : > { %1244 = vadd.xlane.f32.xlu0 %v1243_v40 }
 0x261   : > { %1069 = vadd.xlane.f32.xlu1 %v1068_v15 }
 0x263   : > { %1235 = vadd.xlane.f32.xlu0 %v1234_v27 }
 0x265   : > { %1060 = vadd.xlane.f32.xlu1 %v1059_v54 }
 0x267   : > { %1340 = vadd.xlane.f32.xlu0 %v1339_v20 }
 0x269   : > { %1154 = vadd.xlane.f32.xlu1 %v1153_v21 }
 0x26b   : > { %1157 = vadd.xlane.f32.xlu0 %v1156_v22  ;;  %v1246_v22 = vsel %vm1049_vm3, %v2041_v25, 0.0 }
 0x26d   : > { %1166 = vadd.xlane.f32.xlu1 %v1165_v52 }
 0x26f   : > { %1331 = vadd.xlane.f32.xlu0 %v1330_v8 }
 0x271   : > { %1328 = vadd.xlane.f32.xlu1 %v1327_v63 }
 0x272   : > { %v1230_v50 = vpop.xlane.xlu0 %1229 }
 0x273   : > { %v1250_v32 = vmul.f32 0.015625, %v1230_v50  ;;  %1343 = vadd.xlane.f32.xlu0 %v1342_v30 }
 0x275   : > { %1169 = vadd.xlane.f32.xlu1 %v1168_v31  ;;  %v1258_v35 = vsub.f32 %v1964_v29, %v1250_v32 }
 0x276   : > { %v1134_v61 = vpop.permute.xlu0 %1133 }
 0x277   : > { %v1266_v37 = vmul.f32 %v1258_v35, %v1960_v13  ;;  %1334 = vadd.xlane.f32.xlu0 %v1333_v48  ;;  %v1159_v59 = vsel %vm1049_vm3, %v1134_v61, 0.0 }
 0x279   : > { %1160 = vadd.xlane.f32.xlu1 %v1159_v59  ;;  %v1274_v55 = vsel %vm1049_vm3, %v1266_v37, 0.0 }
 0x27a   : > { %v1275_v23 = vadd.f32 %v1274_v55, %v1273_v60  ;;  %v1142_v4 = vpop.permute.xlu0 %1141 }
 0x27b   : > { %1346 = vadd.xlane.f32.xlu0 %v1345_v0  ;;  %v1171_v58 = vsel %vm1049_vm3, %v1142_v4, 0.0 }
 0x27d   : > { %1172 = vadd.xlane.f32.xlu1 %v1171_v58 }
 0x280   : > { %v1058_v28 = vpop.xlane.xlu1 %1057 }
 0x281   : > { %v1076_v19 = vmul.f32 0.015625, %v1058_v28 }
 0x283   : > { %v1084_v40 = vsub.f32 %v1984_v38, %v1076_v19 }
 0x284   : > { %v1310_v15 = vpop.permute.xlu1 %1309 }
 0x285   : > { %v1092_v27 = vmul.f32 %v1084_v40, %v2000_v45  ;;  %v1336_v54 = vsel %vm1049_vm3, %v1310_v15, 0.0 }
 0x286   : > { %1337 = vadd.xlane.f32.xlu0 %v1336_v54 }
 0x287   : > { %v1101_v20 = vsel %vm1049_vm3, %v1092_v27, 0.0 }
 0x288   : > { %v1102_v21 = vadd.f32 %v1101_v20, %v1100_v41  ;;  %v1071_v41 = vsel %vm1049_vm3, %v2037_v24, 0.0 }
 0x28a   : > { %1247 = vadd.xlane.f32.xlu0 %v1246_v22 }
 0x2ab   : > { %v1233_v52 = vpop.xlane.xlu0 %1232 }
 0x2ac   : > { %v1251_v43 = vmul.f32 0.015625, %v1233_v52 }
 0x2ae   : > { %v1259_v8 = vsub.f32 %v1994_v44, %v1251_v43 }
 0x2af   : > { %v1136_v63 = vpop.permute.xlu0 %1135 }
 0x2b0   : > { %v1267_v3 = vmul.f32 %v1259_v8, %v2004_v16  ;;  %v1162_v50 = vsel %vm1049_vm3, %v1136_v63, 0.0 }
 0x2b1   : > { %1163 = vadd.xlane.f32.xlu1 %v1162_v50 }
 0x2b2   : > { %v1276_v30 = vsel %vm1049_vm3, %v1267_v3, 0.0 }
 0x2b3   : > { %v1277_v32 = vadd.f32 %v1276_v30, %v1275_v23  ;;  %v1144_v7 = vpop.permute.xlu0 %1143 }
 0x2b4   : > { %v1174_v48 = vsel %vm1049_vm3, %v1144_v7, 0.0 }
 0x2b5   : > { %v1064_v31 = vpop.xlane.xlu1 %1063  ;;  %1072 = vadd.xlane.f32.xlu1 %v1071_v41 }
 0x2b6   : > { %v1078_v35 = vmul.f32 0.015625, %v1064_v31 }
 0x2b8   : > { %v1086_v61 = vsub.f32 %v1952_v56, %v1078_v35 }
 0x2b9   : > { %v1318_v47 = vpop.permute.xlu1 %1317  ;;  %1175 = vadd.xlane.f32.xlu1 %v1174_v48 }
 0x2ba   : > { %v1348_v37 = vsel %vm1049_vm3, %v1318_v47, 0.0  ;;  %v1094_v35 = vmul.f32 %v1086_v61, %v1991_v42 }
 0x2bb   : > { %1349 = vadd.xlane.f32.xlu0 %v1348_v37 }
 0x2e4   : > { %v1239_v59 = vpop.xlane.xlu0 %1238 }
 0x2e5   : > { %v1253_v4 = vmul.f32 0.015625, %v1239_v59 }
 0x2e7   : > { %v1261_v40 = vsub.f32 %v1958_v36, %v1253_v4 }
 0x2e8   : > { %v1242_v60 = vpop.xlane.xlu0 %1241 }
 0x2e9   : > { %v1254_v58 = vmul.f32 0.015625, %v1242_v60  ;;  %v1269_v50 = vmul.f32 %v1261_v40, %v2018_v53 }
 0x2ea   : > { %v1067_v55 = vpop.xlane.xlu1 %1066 }
 0x2eb   : > { %v1079_v28 = vmul.f32 0.015625, %v1067_v55  ;;  %v1262_v52 = vsub.f32 %v1986_v62, %v1254_v58 }
 0x2ec   : > { %v1245_v23 = vpop.xlane.xlu0 %1244 }
 0x2ed   : > { %v1255_v15 = vmul.f32 0.015625, %v1245_v23  ;;  %v1087_v8 = vsub.f32 %v1979_v1, %v1079_v28  ;;  %v1270_v59 = vmul.f32 %v1262_v52, %v2052_v10  ;;  %v1280_v28 = vsel %vm1049_vm3, %v1269_v50, 0.0 }
 0x2ee   : > { %v1070_v0 = vpop.xlane.xlu1 %1069 }
 0x2ef   : > { %v1080_v20 = vmul.f32 0.015625, %v1070_v0  ;;  %v1263_v30 = vsub.f32 %v2014_v33, %v1255_v15  ;;  %v1095_v23 = vmul.f32 %v1087_v8, %v2050_v5 }
 0x2f0   : > { %v1236_v19 = vpop.xlane.xlu0 %1235 }
 0x2f1   : > { %v1252_v27 = vmul.f32 0.015625, %v1236_v19  ;;  %v1088_v48 = vsub.f32 %v2007_v46, %v1080_v20  ;;  %v1271_v19 = vmul.f32 %v1263_v30, %v2034_v14  ;;  %v1107_v8 = vsel %vm1049_vm3, %v1095_v23, 0.0 }
 0x2f2   : > { %v1061_v54 = vpop.xlane.xlu1 %1060 }
 0x2f3   : > { %v1077_v22 = vmul.f32 0.015625, %v1061_v54  ;;  %v1260_v43 = vsub.f32 %v2021_v9, %v1252_v27  ;;  %v1105_v54 = vsel %vm1049_vm3, %v1094_v35, 0.0  ;;  %v1096_v20 = vmul.f32 %v1088_v48, %v2032_v39 }
 0x2f4   : > { %v1341_v3 = vpop.xlane.xlu0 %1340 }
 0x2f5   : > { %v1085_v63 = vsub.f32 %v2012_v51, %v1077_v22  ;;  %v1268_v31 = vmul.f32 %v1260_v43, %v2030_v11  ;;  %v2175_v41 = vmul.f32 0.015625, %v1341_v3  ;;  %v1109_v35 = vsel %vm1049_vm3, %v1096_v20, 0.0 }
 0x2f6   : > { %v1155_v7 = vpop.xlane.xlu1 %1154 }
 0x2f7   : > { %v1093_v47 = vmul.f32 %v1085_v63, %v2025_v57  ;;  %v1177_v37 = vmul.f32 0.015625, %v1155_v7  ;;  %v1278_v60 = vsel %vm1049_vm3, %v1268_v31, 0.0  ;;  %v1363_v55 = vsub.f32 %v1958_v36, %v2175_v41 }
 0x2f8   : > { %v1279_v4 = vadd.f32 %v1278_v60, %v1277_v32  ;;  %v1158_v61 = vpop.xlane.xlu0 %1157  ;;  %v1282_v32 = vsel %vm1049_vm3, %v1270_v59, 0.0 }
 0x2f9   : > { %v1103_v0 = vsel %vm1049_vm3, %v1093_v47, 0.0  ;;  %v1185_v58 = vsub.f32 %v1941_v17, %v1177_v37  ;;  %v1178_v15 = vmul.f32 0.015625, %v1158_v61 }
 0x2fa   : > { %v1104_v40 = vadd.f32 %v1103_v0, %v1102_v21  ;;  %v2189_v27 = vpop.xlane.xlu1 %1166  ;;  %v1281_v22 = vadd.f32 %v1280_v28, %v1279_v4  ;;  %v1284_v21 = vsel %vm1049_vm3, %v1271_v19, 0.0 }
 0x2fb   : > { %v1193_v43 = vmul.f32 %v1185_v58, %v1970_v12  ;;  %v1186_v17 = vsub.f32 %v1956_v6, %v1178_v15 }
 0x2fc   : > { %v1106_v52 = vadd.f32 %v1105_v54, %v1104_v40  ;;  %v1332_v63 = vpop.xlane.xlu0 %1331  ;;  %v1283_v3 = vadd.f32 %v1282_v32, %v1281_v22 }
 0x2fd   : > { %v1194_v50 = vmul.f32 %v1186_v17, %v1950_v2  ;;  %v1352_v30 = vmul.f32 0.015625, %v1332_v63  ;;  %v1202_v12 = vsel %vm1201_vm5, %v1193_v43, 0.0 }
 0x2fe   : > { %v1329_v31 = vpop.xlane.xlu1 %1328  ;;  %v1108_v7 = vadd.f32 %v1107_v8, %v1106_v52  ;;  %v1285_v47 = vadd.f32 %v1284_v21, %v1283_v3 }
 0x2ff   : > { %v1351_v48 = vmul.f32 0.015625, %v1329_v31  ;;  %v1203_v6 = vsel %vm1201_vm5, %v1194_v50, 0.0  ;;  %v1360_v37 = vsub.f32 %v1964_v29, %v1352_v30 }
 0x300   : > { %v2203_v59 = vadd.f32 %v1109_v35, %v1108_v7  ;;  %v1204_v60 = vadd.f32 %v1203_v6, %v1202_v12  ;;  %v1344_v2 = vpop.xlane.xlu0 %1343 }
 0x301   : > { %v1359_v23 = vsub.f32 %v1948_v49, %v1351_v48  ;;  %v1368_v4 = vmul.f32 %v1360_v37, %v1960_v13  ;;  %v1356_v8 = vmul.f32 0.015625, %v1344_v2 }
 0x302   : > { %v1170_v0 = vpop.xlane.xlu1 %1169 }
 0x303   : > { %v1367_v58 = vmul.f32 %v1359_v23, %v1972_v18  ;;  %v1376_v61 = vsel %vm1201_vm5, %v1368_v4, 0.0  ;;  %v1364_v50 = vsub.f32 %v1986_v62, %v1356_v8 }
 0x304   : > { %v1335_v19 = vpop.xlane.xlu0 %1334 }
 0x305   : > { %v1375_v28 = vsel %vm1201_vm5, %v1367_v58, 0.0  ;;  %v1353_v15 = vmul.f32 0.015625, %v1335_v19  ;;  %v1372_v7 = vmul.f32 %v1364_v50, %v2052_v10 }
 0x306   : > { %v1377_v40 = vadd.f32 %v1376_v61, %v1375_v28  ;;  %v1161_v54 = vpop.xlane.xlu1 %1160  ;;  %v1181_v61 = vmul.f32 0.015625, %v2189_v27  ;;  %v1182_v28 = vmul.f32 0.015625, %v1170_v0 }
 0x307   : > { %v1179_v29 = vmul.f32 0.015625, %v1161_v54  ;;  %v1361_v20 = vsub.f32 %v1994_v44, %v1353_v15 }
 0x308   : > { %v1347_v17 = vpop.xlane.xlu0 %1346  ;;  %v1190_v54 = vsub.f32 %v1979_v1, %v1182_v28 }
 0x309   : > { %v1187_v22 = vsub.f32 %v1984_v38, %v1179_v29  ;;  %v1369_v49 = vmul.f32 %v1361_v20, %v2004_v16  ;;  %v1357_v3 = vmul.f32 0.015625, %v1347_v17 }
 0x30a   : > { %v1173_v58 = vpop.xlane.xlu1 %1172  ;;  %v1198_v27 = vmul.f32 %v1190_v54, %v2050_v5 }
 0x30b   : > { %v1195_v13 = vmul.f32 %v1187_v22, %v2000_v45  ;;  %v1378_v32 = vsel %vm1201_vm5, %v1369_v49, 0.0  ;;  %v1371_v45 = vmul.f32 %v1363_v55, %v2018_v53  ;;  %v1365_v16 = vsub.f32 %v2014_v33, %v1357_v3 }
 0x30c   : > { %v1379_v18 = vadd.f32 %v1378_v32, %v1377_v40  ;;  %v1384_v33 = vsel %vm1201_vm5, %v1372_v7, 0.0  ;;  %v1183_v40 = vmul.f32 0.015625, %v1173_v58 }
 0x30d   : > { %v1205_v52 = vsel %vm1201_vm5, %v1195_v13, 0.0  ;;  %v1373_v12 = vmul.f32 %v1365_v16, %v2034_v14 }
 0x30e   : > { %v1206_v43 = vadd.f32 %v1205_v52, %v1204_v60  ;;  %v1191_v49 = vsub.f32 %v2007_v46, %v1183_v40 }
 0x30f   : > { %v1386_v10 = vsel %vm1201_vm5, %v1373_v12, 0.0 }
 0x313   : > { %v1338_v63 = vpop.xlane.xlu0 %1337 }
 0x314   : > { %v1354_v21 = vmul.f32 0.015625, %v1338_v63 }
 0x316   : > { %v1362_v44 = vsub.f32 %v2021_v9, %v1354_v21  ;;  %v1382_v9 = vsel %vm1201_vm5, %v1371_v45, 0.0 }
 0x317   : > { %v1248_v38 = vpop.xlane.xlu0 %1247 }
 0x318   : > { %v1370_v30 = vmul.f32 %v1362_v44, %v2030_v11  ;;  %v1256_v31 = vmul.f32 0.015625, %v1248_v38 }
 0x31a   : > { %v1380_v35 = vsel %vm1201_vm5, %v1370_v30, 0.0  ;;  %v1264_v48 = vsub.f32 %v2041_v25, %v1256_v31 }
 0x31b   : > { %v1381_v62 = vadd.f32 %v1380_v35, %v1379_v18 }
 0x31c   : > { %v1272_v36 = vmul.f32 %v1264_v48, %v2067_v34 }
 0x31d   : > { %v1383_v53 = vadd.f32 %v1382_v9, %v1381_v62 }
 0x31e   : > { %v1286_v11 = vsel %vm1049_vm3, %v1272_v36, 0.0 }
 0x31f   : > { %v1287_v41 = vadd.f32 %v1286_v11, %v1285_v47  ;;  %v1385_v55 = vadd.f32 %v1384_v33, %v1383_v53  ;;  %v1189_v47 = vsub.f32 %v1952_v56, %v1181_v61 }
 0x321   : > { %v1288_v6 = vrot.slane %v1287_v41, 4  ;;  %v1387_v37 = vadd.f32 %v1386_v10, %v1385_v55  ;;  %v1197_v22 = vmul.f32 %v1189_v47, %v1991_v42 }
 0x323   : > { %v1289_v60 = vadd.f32 %v1288_v6, %v1287_v41  ;;  %v1209_v1 = vsel %vm1201_vm5, %v1197_v22, 0.0 }
 0x325   : > { %v1290_v23 = vrot.slane %v1289_v60, 2 }
 0x327   : > { %v1291_v2 = vadd.f32 %v1290_v23, %v1289_v60 }
 0x329   : > { %v1292_v4 = vrot.slane %v1291_v2, 1 }
 0x32b   : > { %v1293_v14 = vadd.f32 %v1292_v4, %v1291_v2 }
 0x32d   : > { %1294 = vst.msk [vmem:[%s2077_s8 + $0x4] sm:$0x1] %vm1119_vm6, %v1293_v14 }
 0x33e   : > { %v1164_v19 = vpop.xlane.xlu1 %1163 }
 0x33f   : > { %v1180_v15 = vmul.f32 0.015625, %v1164_v19 }
 0x341   : > { %v1188_v29 = vsub.f32 %v2012_v51, %v1180_v15  ;;  %v1199_v51 = vmul.f32 %v1191_v49, %v2032_v39 }
 0x342   : > { %v1073_v20 = vpop.xlane.xlu1 %1072 }
 0x343   : > { %v1196_v13 = vmul.f32 %v1188_v29, %v2025_v57  ;;  %v1081_v32 = vmul.f32 0.015625, %v1073_v20  ;;  %v1211_v57 = vsel %vm1201_vm5, %v1198_v27, 0.0  ;;  %v1213_v44 = vsel %vm1201_vm5, %v1199_v51, 0.0 }
 0x345   : > { %v1207_v0 = vsel %vm1201_vm5, %v1196_v13, 0.0  ;;  %v1089_v56 = vsub.f32 %v2037_v24, %v1081_v32 }
 0x346   : > { %v1208_v18 = vadd.f32 %v1207_v0, %v1206_v43  ;;  %v1176_v52 = vpop.xlane.xlu1 %1175 }
 0x347   : > { %v1097_v17 = vmul.f32 %v1089_v56, %v2065_v26  ;;  %v1184_v42 = vmul.f32 0.015625, %v1176_v52 }
 0x348   : > { %v1350_v8 = vpop.xlane.xlu0 %1349  ;;  %v1210_v46 = vadd.f32 %v1209_v1, %v1208_v18 }
 0x349   : > { %v1358_v63 = vmul.f32 0.015625, %v1350_v8  ;;  %v1111_v5 = vsel %vm1049_vm3, %v1097_v17, 0.0  ;;  %v1192_v3 = vsub.f32 %v2037_v24, %v1184_v42 }
 0x34a   : > { %v1112_v21 = vadd.f32 %v1111_v5, %v2203_v59  ;;  %v1212_v43 = vadd.f32 %v1211_v57, %v1210_v46 }
 0x34b   : > { %v1366_v50 = vsub.f32 %v2041_v25, %v1358_v63  ;;  %v1200_v39 = vmul.f32 %v1192_v3, %v2065_v26 }
 0x34c   : > { %v1113_v38 = vrot.slane %v1112_v21, 4  ;;  %v1214_v45 = vadd.f32 %v1213_v44, %v1212_v43 }
 0x34d   : > { %v1374_v16 = vmul.f32 %v1366_v50, %v2067_v34  ;;  %v1215_v30 = vsel %vm1201_vm5, %v1200_v39, 0.0 }
 0x34e   : > { %v1114_v31 = vadd.f32 %v1113_v38, %v1112_v21  ;;  %v1216_v7 = vadd.f32 %v1215_v30, %v1214_v45 }
 0x34f   : > { %v1388_v24 = vsel %vm1201_vm5, %v1374_v16, 0.0 }
 0x350   : > { %v1389_v35 = vadd.f32 %v1388_v24, %v1387_v37  ;;  %v1115_v59 = vrot.slane %v1114_v31, 2  ;;  %v1217_v48 = vrot.slane %v1216_v7, 4 }
 0x352   : > { %v1390_v62 = vrot.slane %v1389_v35, 4  ;;  %v1116_v25 = vadd.f32 %v1115_v59, %v1114_v31  ;;  %v1218_v9 = vadd.f32 %v1217_v48, %v1216_v7 }
 0x354   : > { %v1391_v26 = vadd.f32 %v1390_v62, %v1389_v35  ;;  %v1117_v12 = vrot.slane %v1116_v25, 1  ;;  %v1219_v36 = vrot.slane %v1218_v9, 2 }
 0x356   : > { %v1392_v53 = vrot.slane %v1391_v26, 2  ;;  %v1118_v34 = vadd.f32 %v1117_v12, %v1116_v25  ;;  %v1220_v33 = vadd.f32 %v1219_v36, %v1218_v9 }
 0x358   : > { %v1393_v11 = vadd.f32 %v1392_v53, %v1391_v26  ;;  %1120 = vst.msk [vmem:[%s2077_s8] sm:$0x1] %vm1119_vm6, %v1118_v34  ;;  %v1221_v41 = vrot.slane %v1220_v33, 1 }
 0x35a   : > { %v1394_v55 = vrot.slane %v1393_v11, 1  ;;  %v1222_v10 = vadd.f32 %v1221_v41, %v1220_v33 }
 0x35c   : > { %v1395_v6 = vadd.f32 %v1394_v55, %v1393_v11  ;;  %1224 = vst.msk [vmem:[%s2077_s8] sm:$0x1] %vm1223_vm7, %v1222_v10 }
 0x35e   : > { %1396 = vst.msk [vmem:[%s2077_s8 + $0x4] sm:$0x1] %vm1223_vm7, %v1395_v6 }
 0x35f PF: > { %s14_s15 = sadd.s32 1, %s1601_s15  }
 0x360   : > { %p11_p4 = scmp.ge.s32.totalorder %s14_s15, 4  }
 0x362   :  { %13 = sbr.rel (!%p11_p4) target bundleno = 1 (0x1), region = 77 }

</bundles_post_ra>
